<compile_context>
chip_gen: v7x
topology: tpu7x:2x2x1
jax: 0.10.0
libtpu: 0.0.40
codegen_flags: <defaults>
</compile_context>

<pallas_src>
import functools

import jax
import jax.numpy as jnp
import numpy as np
from jax import lax
from jax.experimental import pallas as pl
from jax.experimental.pallas import tpu as pltpu

NACT = 3          # (push, pop, noop)
PAD = 0           # nn.Embedding padding_idx
USE_STACK = True  # args.use_stack


def shift_matrix(n):
  W_up = np.eye(n)
  for i in range(n - 1):
    W_up[i, :] = W_up[i + 1, :]
  W_up[n - 1, :] *= 0
  W_down = np.eye(n)
  for i in range(n - 1, 0, -1):
    W_down[i, :] = W_down[i - 1, :]
  W_down[0, :] *= 0
  return W_up, W_down


def _round_up(x, m):
  return ((x + m - 1) // m) * m


# ----------------------------- Pallas kernel ---------------------------------
def _decoder_srnn_kernel(
    tok0_ref, hid0_ref, st0_ref,                 # initial state (lane-dense)
    wtok_ref, whid_ref, wst_ref, bf_ref,         # fused weights / bias
    wo_ref, bo_ref, empty_ref,                   # output head, empty stack elem
    logp_ref, hidout_ref, stout_ref,             # per-step outputs (lane-dense)
    tok_sc, hid_sc, st_sc,                       # VMEM-carried recurrent state
    *, nstack, stack_size, elem_size, hp, vp):
  f32 = jnp.float32
  NE = nstack * elem_size
  SNE = stack_size * NE
  t = pl.program_id(0)

  @pl.when(t == 0)
  def _init():
    tok_sc[...] = tok0_ref[...]
    hid_sc[...] = hid0_ref[...]
    st_sc[...] = st0_ref[...]

  tok = tok_sc[...]              # (B, VP) one-hot of current input token
  hid = hid_sc[...]              # (B, HP) zero-padded hidden
  st = st_sc[...]                # (B, SNE) stacks, lane = s*NE + n*E + e
  B = hid.shape[0]

  # --- ONE fused MXU matmul, K-split per input segment (no lane-offset concat).
  # Output columns (all 128-aligned blocks):
  #   [0,hp)                     mid_hidden (incl. embedding + stack read)
  #   [hp+0*SNE, hp+1*SNE)       push logits, lane-expanded over (slot, elem)
  #   [hp+1*SNE, hp+2*SNE)       pop  logits, lane-expanded
  #   [hp+2*SNE, hp+3*SNE)       noop logits, lane-expanded
  #   [hp+3*SNE, hp+4*SNE)       push values, lane-expanded
  #   [hp+4*SNE, hp+5*SNE)       stacks shifted "down"  (slot s <- slot s-1)
  #   [hp+5*SNE, hp+6*SNE)       stacks shifted "up"    (slot s <- slot s+1)
  fused = (jnp.dot(tok, wtok_ref[...], preferred_element_type=f32)
           + jnp.dot(hid, whid_ref[...], preferred_element_type=f32)
           + jnp.dot(st, wst_ref[...], preferred_element_type=f32)
           + bf_ref[...])

  mid = fused[:, 0:hp]
  lg_push = fused[:, hp + 0 * SNE:hp + 1 * SNE]
  lg_pop = fused[:, hp + 1 * SNE:hp + 2 * SNE]
  lg_noop = fused[:, hp + 2 * SNE:hp + 3 * SNE]
  pv = jnp.tanh(fused[:, hp + 3 * SNE:hp + 4 * SNE])
  st_prev = fused[:, hp + 4 * SNE:hp + 5 * SNE]
  st_next = fused[:, hp + 5 * SNE:hp + 6 * SNE]

  # 3-way softmax over (push, pop, noop), lane-wise on the expanded layout.
  m = jnp.maximum(jnp.maximum(lg_push, lg_pop), lg_noop)
  e_push = jnp.exp(lg_push - m)
  e_pop = jnp.exp(lg_pop - m)
  e_noop = jnp.exp(lg_noop - m)
  inv = 1.0 / (e_push + e_pop + e_noop)   # exact: keep push+pop+noop == 1
  pp = e_push * inv
  po = e_pop * inv
  pn = e_noop * inv

  # stack update: 3 full-vreg FMAs + lane-masked selects for slot 0 / S-1.
  blend = pp * st_prev + po * st_next + pn * st
  lane = lax.broadcasted_iota(jnp.int32, (B, SNE), 1)
  empty_full = jnp.broadcast_to(empty_ref[...], (B, SNE))
  new_st = jnp.where(lane < NE, pp * pv,
                     jnp.where(lane >= (stack_size - 1) * NE, empty_full, blend))

  # hidden update + output head (padded lanes stay zero; pad logits are -1e30).
  new_hid = jnp.tanh(mid)
  logits = jnp.dot(new_hid, wo_ref[...], preferred_element_type=f32) + bo_ref[...]
  mx = jnp.max(logits, axis=1, keepdims=True)
  z = logits - mx
  lse = jnp.log(jnp.sum(jnp.exp(z), axis=1, keepdims=True))
  logp = z - lse                                     # LogSoftmax(dim=1)

  # greedy argmax (first maximal column) -> one-hot input for the next step.
  col = lax.broadcasted_iota(jnp.int32, (B, vp), 1)
  idx = jnp.min(jnp.where(z == 0.0, col, vp), axis=1, keepdims=True)
  next_oh = (col == idx).astype(f32)

  tok_sc[...] = next_oh
  hid_sc[...] = new_hid
  st_sc[...] = new_st

  logp_ref[...] = logp          # (B, VP)  128-lane store
  hidout_ref[...] = new_hid     # (B, HP)  128-lane store
  stout_ref[...] = new_st       # (B, SNE) 128-lane store


# ------------------------------ parameters ------------------------------------
def init_params(key, hidden_size, output_size, nstack, stack_depth,
                stack_size, stack_elem_size):
  H, V, N, E = hidden_size, output_size, nstack, stack_elem_size
  D = stack_depth
  ks = jax.random.split(key, 8)

  def linear(k, fan_in, fan_out):
    kw, kb = jax.random.split(k)
    bound = 1.0 / np.sqrt(fan_in)
    W = jax.random.uniform(kw, (fan_out, fan_in), jnp.float32, -bound, bound)
    b = jax.random.uniform(kb, (fan_out,), jnp.float32, -bound, bound)
    return W, b

  emb = jax.random.normal(ks[0], (V, H), jnp.float32)
  emb = emb.at[PAD].set(0.0)                       # padding_idx row is zero
  W_i2h, b_i2h = linear(ks[1], H, H)
  W_h2h, b_h2h = linear(ks[2], H, H)
  W_h2a, b_h2a = linear(ks[3], H, N * NACT)
  W_h2s, b_h2s = linear(ks[4], H, N * E)
  W_s2h, b_s2h = linear(ks[5], D * E, H)
  W_h2o, b_h2o = linear(ks[6], H, V)
  empty_elem = jax.random.normal(ks[7], (1, E), jnp.float32)
  return dict(emb=emb, W_i2h=W_i2h, b_i2h=b_i2h, W_h2h=W_h2h, b_h2h=b_h2h,
              W_h2a=W_h2a, b_h2a=b_h2a, W_h2s=W_h2s, b_h2s=b_h2s,
              W_s2h=W_s2h, b_s2h=b_s2h, W_h2o=W_h2o, b_h2o=b_h2o,
              empty_elem=empty_elem)


# -------- one-time weight re-layout (hoisted out of the decode loop) ----------
def prepare_kernel_weights(p, *, nstack, stack_depth, stack_size,
                           stack_elem_size, hidden_size, output_size):
  N, D, S, E = nstack, stack_depth, stack_size, stack_elem_size
  H, V = hidden_size, output_size
  NE = N * E
  SNE = S * NE
  HP = _round_up(H, 128)
  VP = _round_up(V, 128)
  COLS = HP + 6 * SNE
  o_mid, o_push, o_pop, o_noop, o_pv, o_prev, o_next = (
      0, HP, HP + SNE, HP + 2 * SNE, HP + 3 * SNE, HP + 4 * SNE, HP + 5 * SNE)

  emb = np.asarray(p['emb'], np.float32)          # (V, H)
  Wi = np.asarray(p['W_i2h'], np.float32)
  bi = np.asarray(p['b_i2h'], np.float32)
  Wh = np.asarray(p['W_h2h'], np.float32)
  bh = np.asarray(p['b_h2h'], np.float32)
  Wa = np.asarray(p['W_h2a'], np.float32)          # (N*NACT, H)
  ba = np.asarray(p['b_h2a'], np.float32)
  Ws = np.asarray(p['W_h2s'], np.float32)          # (N*E, H)
  bs = np.asarray(p['b_h2s'], np.float32)
  Wr = np.asarray(p['W_s2h'], np.float32)          # (H, D*E)
  br = np.asarray(p['b_s2h'], np.float32)
  Wo = np.asarray(p['W_h2o'], np.float32)          # (V, H)
  bo = np.asarray(p['b_h2o'], np.float32)
  empty = np.asarray(p['empty_elem'], np.float32)  # (1, E)

  # token segment: one_hot @ (emb @ W_i2h.T) feeds only the mid block
  wtok = np.zeros((VP, COLS), np.float32)
  wtok[:V, o_mid:o_mid + H] = emb @ Wi.T

  # hidden segment: mid + lane-expanded action logits + lane-expanded push vals
  whid = np.zeros((HP, COLS), np.float32)
  whid[:H, o_mid:o_mid + H] = Wh.T

  def expand_act_w(a):            # column s*NE+n*E+e  <-  hid2act row n*NACT+a
    rows = Wa[[n * NACT + a for n in range(N)], :]      # (N, H)
    rows = np.repeat(rows, E, axis=0)                   # (NE, H)
    return np.tile(rows, (S, 1)).T                      # (H, SNE)

  def expand_act_b(a):
    b = ba[[n * NACT + a for n in range(N)]]
    return np.tile(np.repeat(b, E), S)                  # (SNE,)

  whid[:H, o_push:o_push + SNE] = expand_act_w(0)
  whid[:H, o_pop:o_pop + SNE] = expand_act_w(1)
  whid[:H, o_noop:o_noop + SNE] = expand_act_w(2)
  whid[:H, o_pv:o_pv + SNE] = np.tile(Ws, (S, 1)).T     # push vals per slot

  # stack segment: top-D read into mid, plus in-matmul slot shifts
  wst = np.zeros((SNE, COLS), np.float32)
  wread = np.repeat(Wr.T.reshape(D, 1, E, H), N, axis=1).reshape(D * NE, H)
  wst[:D * NE, o_mid:o_mid + H] = wread
  W_up, W_down = shift_matrix(S)
  wst[:, o_prev:o_prev + SNE] = np.kron(W_down.T, np.eye(NE)).astype(np.float32)
  wst[:, o_next:o_next + SNE] = np.kron(W_up.T, np.eye(NE)).astype(np.float32)

  bfused = np.zeros((1, COLS), np.float32)
  bfused[0, o_mid:o_mid + H] = bi + bh + N * br
  bfused[0, o_push:o_push + SNE] = expand_act_b(0)
  bfused[0, o_pop:o_pop + SNE] = expand_act_b(1)
  bfused[0, o_noop:o_noop + SNE] = expand_act_b(2)
  bfused[0, o_pv:o_pv + SNE] = np.tile(bs, S)

  wo_pad = np.zeros((HP, VP), np.float32)
  wo_pad[:H, :V] = Wo.T
  bo_pad = np.full((1, VP), -1e30, np.float32)          # pad logits ~ -inf
  bo_pad[0, :V] = bo

  empty_full = np.tile(empty, (1, S * N))               # (1, SNE)

  return dict(wtok=jnp.asarray(wtok), whid=jnp.asarray(whid),
              wst=jnp.asarray(wst), bfused=jnp.asarray(bfused),
              wo=jnp.asarray(wo_pad), bo=jnp.asarray(bo_pad),
              empty=jnp.asarray(empty_full))


# stacks layout converters (only at sequence boundaries, not per step)
def stacks_to_kernel(stacks):     # (B, N, S, E) -> (B, S*N*E)
  B, N, S, E = stacks.shape
  return jnp.transpose(stacks, (0, 2, 1, 3)).reshape(B, S * N * E)


def stacks_from_kernel(st_k, nstack, stack_size, stack_elem_size):
  lead = st_k.shape[:-1]
  out = st_k.reshape(*lead, stack_size, nstack, stack_elem_size)
  return jnp.swapaxes(out, -3, -2)   # (..., N, S, E)


# ------------------------------ decode function --------------------------------
def make_decoder_decode(*, hidden_size, output_size, nstack, stack_depth,
                        stack_size, stack_elem_size, num_steps):
  H, V = hidden_size, output_size
  N, D, S, E = nstack, stack_depth, stack_size, stack_elem_size
  NE = N * E
  SNE = S * NE
  HP = _round_up(H, 128)
  VP = _round_up(V, 128)
  T = num_steps
  assert S >= 3, "kernel assumes at least 3 stack slots"
  kernel = functools.partial(_decoder_srnn_kernel, nstack=N, stack_size=S,
                             elem_size=E, hp=HP, vp=VP)

  @jax.jit
  def decode(tokens, hidden, stacks_k, kw):
    B = tokens.shape[0]
    tok0 = jax.nn.one_hot(tokens, VP, dtype=jnp.float32)
    hid0 = jnp.zeros((B, HP), jnp.float32).at[:, :H].set(
        hidden.astype(jnp.float32))
    vmem = lambda: pl.BlockSpec(memory_space=pltpu.MemorySpace.VMEM)
    grid_spec = pltpu.PrefetchScalarGridSpec(
        num_scalar_prefetch=0,
        grid=(T,),
        in_specs=[vmem() for _ in range(10)],      # weights/state: loaded once
        out_specs=[
            pl.BlockSpec((None, B, VP), lambda t: (t, 0, 0)),
            pl.BlockSpec((None, B, HP), lambda t: (t, 0, 0)),
            pl.BlockSpec((None, B, SNE), lambda t: (t, 0, 0)),
        ],
        scratch_shapes=[
            pltpu.VMEM((B, VP), jnp.float32),      # next-token one-hot
            pltpu.VMEM((B, HP), jnp.float32),      # hidden (padded)
            pltpu.VMEM((B, SNE), jnp.float32),     # stacks (kernel layout)
        ])
    out_shape = (
        jax.ShapeDtypeStruct((T, B, VP), jnp.float32),   # padded log-probs
        jax.ShapeDtypeStruct((T, B, HP), jnp.float32),   # padded hidden
        jax.ShapeDtypeStruct((T, B, SNE), jnp.float32),  # stacks (kernel layout)
    )
    logp_p, hid_p, st_all = pl.pallas_call(
        kernel,
        out_shape=out_shape,
        grid_spec=grid_spec,
        compiler_params=pltpu.CompilerParams(
            dimension_semantics=("arbitrary",)),    # recurrence over time
    )(tok0, hid0, stacks_k, kw['wtok'], kw['whid'], kw['wst'], kw['bfused'],
      kw['wo'], kw['bo'], kw['empty'])
    logp = logp_p[:, :, :V]
    hid = hid_p[:, :, :H]
    # top1 recomputed from logp (identical to the in-kernel feedback argmax);
    # avoids a 1-lane masked store from the kernel.
    top1 = jnp.argmax(logp, axis=-1).astype(jnp.int32)[..., None]
    # TODO(synk): torch returns int64 indices here; int32 kept on TPU.
    return logp, hid, top1, st_all

  return decode


# --------------------------- pure-JAX reference --------------------------------
def reference_forward(tokens, hidden, stacks, p, *, nstack, stack_depth,
                      stack_size, stack_elem_size):
  N, D, S, E = nstack, stack_depth, stack_size, stack_elem_size
  B = tokens.shape[0]
  emb = p['emb'][tokens]
  mid = (emb @ p['W_i2h'].T + p['b_i2h'] + hidden @ p['W_h2h'].T + p['b_h2h'])
  if USE_STACK:
    stack_vals = stacks[:, :, :D, :].reshape(B, N, D * E)
    read = jnp.einsum('bnk,hk->bnh', stack_vals, p['W_s2h']) + p['b_s2h']
    mid = mid + read.sum(axis=1)
    act = (hidden @ p['W_h2a'].T + p['b_h2a']).reshape(B, N, NACT)
    act = jax.nn.softmax(act, axis=2)
    p_push, p_pop, p_noop = act[..., 0:1], act[..., 1:2], act[..., 2:3]
    push_vals = jnp.tanh((hidden @ p['W_h2s'].T + p['b_h2s']).reshape(B, N, E))
    W_up, W_down = shift_matrix(S)
    W_up = jnp.asarray(W_up, jnp.float32)
    W_down = jnp.asarray(W_down, jnp.float32)
    new_stacks = (p_push[..., None] * jnp.einsum('su,bnue->bnse', W_down, stacks)
                  + p_pop[..., None] * jnp.einsum('su,bnue->bnse', W_up, stacks)
                  + p_noop[..., None] * stacks)
    new_stacks = new_stacks.at[:, :, 0, :].set(p_push * push_vals)
    new_stacks = new_stacks.at[:, :, S - 1, :].set(
        jnp.broadcast_to(p['empty_elem'], (B, N, E)))
  else:
    new_stacks = stacks
  new_hidden = jnp.tanh(mid)
  logits = new_hidden @ p['W_h2o'].T + p['b_h2o']
  logp = jax.nn.log_softmax(logits, axis=1)
  top1 = jnp.argmax(logits, axis=1)[:, None].astype(jnp.int32)
  return logp, new_hidden, top1, new_stacks


def reference_decode(tokens, hidden, stacks, p, num_steps, **cfg):
  logs, hids, tops, sts = [], [], [], []
  tok = tokens
  for _ in range(num_steps):
    logp, hidden, top1, stacks = reference_forward(tok, hidden, stacks, p, **cfg)
    logs.append(logp); hids.append(hidden); tops.append(top1); sts.append(stacks)
    tok = top1[:, 0]
  return (jnp.stack(logs), jnp.stack(hids), jnp.stack(tops), jnp.stack(sts))


# ----------------------------------- main --------------------------------------
if __name__ == "__main__":
  H, V = 32, 16            # hidden_size, output_size
  N, D, S, E = 2, 2, 8, 8  # nstack, stack_depth, stack_size, stack_elem_size
  B = 8                    # >= f32 sublane minimum (perf-review item)
  T = 6                    # fused decode steps

  key = jax.random.PRNGKey(0)
  kp, kt, kh, ks = jax.random.split(key, 4)
  params = init_params(kp, H, V, N, D, S, E)
  tokens = jax.random.randint(kt, (B,), 0, V, dtype=jnp.int32)
  hidden = jax.random.normal(kh, (B, H), jnp.float32)
  stacks = jax.random.normal(ks, (B, N, S, E), jnp.float32)

  # one-time prep (hoisted out of the decode loop)
  kweights = prepare_kernel_weights(params, nstack=N, stack_depth=D,
                                    stack_size=S, stack_elem_size=E,
                                    hidden_size=H, output_size=V)
  decode = make_decoder_decode(hidden_size=H, output_size=V, nstack=N,
                               stack_depth=D, stack_size=S, stack_elem_size=E,
                               num_steps=T)
  stacks_k = stacks_to_kernel(stacks)

  logp, hid, top1, st_all_k = jax.block_until_ready(
      decode(tokens, hidden, stacks_k, kweights))
  st_all = stacks_from_kernel(st_all_k, N, S, E)

  ref_logp, ref_hid, ref_top1, ref_st = reference_decode(
      tokens, hidden, stacks, params, T, nstack=N, stack_depth=D,
      stack_size=S, stack_elem_size=E)

  np.testing.assert_allclose(np.asarray(logp), np.asarray(ref_logp),
                             rtol=2e-4, atol=2e-4)   # per-step log-probs
  np.testing.assert_allclose(np.asarray(hid), np.asarray(ref_hid),
                             rtol=2e-4, atol=2e-4)   # per-step hidden
  assert np.array_equal(np.asarray(top1), np.asarray(ref_top1))  # greedy tokens
  np.testing.assert_allclose(np.asarray(st_all), np.asarray(ref_st),
                             rtol=2e-4, atol=2e-4)   # per-step stacks
  print("KERNEL_OK")
</pallas_src>

<mosaic_0001>
module attributes {stable_mosaic.version = 11 : i64} {
  func.func @_decoder_srnn_kernel(%arg0: i32, %arg1: memref<8x128xf32, #tpu.memory_space<vmem>>, %arg2: memref<8x128xf32, #tpu.memory_space<vmem>>, %arg3: memref<8x128xf32, #tpu.memory_space<vmem>>, %arg4: memref<128x896xf32, #tpu.memory_space<vmem>>, %arg5: memref<128x896xf32, #tpu.memory_space<vmem>>, %arg6: memref<128x896xf32, #tpu.memory_space<vmem>>, %arg7: memref<1x896xf32, #tpu.memory_space<vmem>>, %arg8: memref<128x128xf32, #tpu.memory_space<vmem>>, %arg9: memref<1x128xf32, #tpu.memory_space<vmem>>, %arg10: memref<1x128xf32, #tpu.memory_space<vmem>>, %arg11: memref<1x8x128xf32, #tpu.memory_space<vmem>>, %arg12: memref<1x8x128xf32, #tpu.memory_space<vmem>>, %arg13: memref<1x8x128xf32, #tpu.memory_space<vmem>>, %arg14: memref<8x128xf32, #tpu.memory_space<vmem>>, %arg15: memref<8x128xf32, #tpu.memory_space<vmem>>, %arg16: memref<8x128xf32, #tpu.memory_space<vmem>>) attributes {dimension_semantics = [#tpu.dimension_semantics<arbitrary>], iteration_bounds = array<i64: 6>, scalar_prefetch = 0 : i64, scratch_operands = 3 : i64, tpu.core_type = #tpu.core_type<tc>, window_params = [{pipeline_mode = #tpu.pipeline_mode<synchronous>, transform_indices = @transform_0, window_bounds = array<i64: 8, 128>}, {pipeline_mode = #tpu.pipeline_mode<synchronous>, transform_indices = @transform_1, window_bounds = array<i64: 8, 128>}, {pipeline_mode = #tpu.pipeline_mode<synchronous>, transform_indices = @transform_2, window_bounds = array<i64: 8, 128>}, {pipeline_mode = #tpu.pipeline_mode<synchronous>, transform_indices = @transform_3, window_bounds = array<i64: 128, 896>}, {pipeline_mode = #tpu.pipeline_mode<synchronous>, transform_indices = @transform_4, window_bounds = array<i64: 128, 896>}, {pipeline_mode = #tpu.pipeline_mode<synchronous>, transform_indices = @transform_5, window_bounds = array<i64: 128, 896>}, {pipeline_mode = #tpu.pipeline_mode<synchronous>, transform_indices = @transform_6, window_bounds = array<i64: 1, 896>}, {pipeline_mode = #tpu.pipeline_mode<synchronous>, transform_indices = @transform_7, window_bounds = array<i64: 128, 128>}, {pipeline_mode = #tpu.pipeline_mode<synchronous>, transform_indices = @transform_8, window_bounds = array<i64: 1, 128>}, {pipeline_mode = #tpu.pipeline_mode<synchronous>, transform_indices = @transform_9, window_bounds = array<i64: 1, 128>}, {transform_indices = @transform_10, window_bounds = array<i64: 1, 8, 128>}, {transform_indices = @transform_11, window_bounds = array<i64: 1, 8, 128>}, {transform_indices = @transform_12, window_bounds = array<i64: 1, 8, 128>}]} {
    %c0_i32 = arith.constant 0 : i32
    %0 = arith.cmpi eq, %arg0, %c0_i32 : i32
    %1 = arith.extui %0 : i1 to i32
    %c0_i32_0 = arith.constant 0 : i32
    %2 = arith.cmpi ne, %1, %c0_i32_0 : i32
    scf.if %2 {
      %c0_43 = arith.constant 0 : index
      %c0_44 = arith.constant 0 : index
      %95 = vector.load %arg1[%c0_43, %c0_44] : memref<8x128xf32, #tpu.memory_space<vmem>>, vector<8x128xf32>
      %c0_45 = arith.constant 0 : index
      %c0_46 = arith.constant 0 : index
      %96 = vector.load %arg14[%c0_45, %c0_46] : memref<8x128xf32, #tpu.memory_space<vmem>>, vector<8x128xf32>
      tpu.vector_store %arg14[%c0_45, %c0_46], %95 {strides = array<i32>} : memref<8x128xf32, #tpu.memory_space<vmem>>, vector<8x128xf32>,
      %c0_47 = arith.constant 0 : index
      %c0_48 = arith.constant 0 : index
      %97 = vector.load %arg2[%c0_47, %c0_48] : memref<8x128xf32, #tpu.memory_space<vmem>>, vector<8x128xf32>
      %c0_49 = arith.constant 0 : index
      %c0_50 = arith.constant 0 : index
      %98 = vector.load %arg15[%c0_49, %c0_50] : memref<8x128xf32, #tpu.memory_space<vmem>>, vector<8x128xf32>
      tpu.vector_store %arg15[%c0_49, %c0_50], %97 {strides = array<i32>} : memref<8x128xf32, #tpu.memory_space<vmem>>, vector<8x128xf32>,
      %c0_51 = arith.constant 0 : index
      %c0_52 = arith.constant 0 : index
      %99 = vector.load %arg3[%c0_51, %c0_52] : memref<8x128xf32, #tpu.memory_space<vmem>>, vector<8x128xf32>
      %c0_53 = arith.constant 0 : index
      %c0_54 = arith.constant 0 : index
      %100 = vector.load %arg16[%c0_53, %c0_54] : memref<8x128xf32, #tpu.memory_space<vmem>>, vector<8x128xf32>
      tpu.vector_store %arg16[%c0_53, %c0_54], %99 {strides = array<i32>} : memref<8x128xf32, #tpu.memory_space<vmem>>, vector<8x128xf32>,
    } else {
    }
    %c0 = arith.constant 0 : index
    %c0_1 = arith.constant 0 : index
    %3 = vector.load %arg14[%c0, %c0_1] : memref<8x128xf32, #tpu.memory_space<vmem>>, vector<8x128xf32>
    %c0_2 = arith.constant 0 : index
    %c0_3 = arith.constant 0 : index
    %4 = vector.load %arg15[%c0_2, %c0_3] : memref<8x128xf32, #tpu.memory_space<vmem>>, vector<8x128xf32>
    %c0_4 = arith.constant 0 : index
    %c0_5 = arith.constant 0 : index
    %5 = vector.load %arg16[%c0_4, %c0_5] : memref<8x128xf32, #tpu.memory_space<vmem>>, vector<8x128xf32>
    %c0_6 = arith.constant 0 : index
    %c0_7 = arith.constant 0 : index
    %6 = vector.load %arg4[%c0_6, %c0_7] : memref<128x896xf32, #tpu.memory_space<vmem>>, vector<128x896xf32>
    %cst = arith.constant dense<0.000000e+00> : vector<8x896xf32>
    %7 = tpu.matmul %3, %6, %cst {dimension_numbers = #tpu.dot_dimension_numbers<[1], [0], [0], [1], [0, 0, 1, 1], [], []>} : vector<8x128xf32>, vector<128x896xf32>, vector<8x896xf32> -> vector<8x896xf32>
    %c0_8 = arith.constant 0 : index
    %c0_9 = arith.constant 0 : index
    %8 = vector.load %arg5[%c0_8, %c0_9] : memref<128x896xf32, #tpu.memory_space<vmem>>, vector<128x896xf32>
    %cst_10 = arith.constant dense<0.000000e+00> : vector<8x896xf32>
    %9 = tpu.matmul %4, %8, %cst_10 {dimension_numbers = #tpu.dot_dimension_numbers<[1], [0], [0], [1], [0, 0, 1, 1], [], []>} : vector<8x128xf32>, vector<128x896xf32>, vector<8x896xf32> -> vector<8x896xf32>
    %10 = arith.addf %7, %9 : vector<8x896xf32>
    %c0_11 = arith.constant 0 : index
    %c0_12 = arith.constant 0 : index
    %11 = vector.load %arg6[%c0_11, %c0_12] : memref<128x896xf32, #tpu.memory_space<vmem>>, vector<128x896xf32>
    %cst_13 = arith.constant dense<0.000000e+00> : vector<8x896xf32>
    %12 = tpu.matmul %5, %11, %cst_13 {dimension_numbers = #tpu.dot_dimension_numbers<[1], [0], [0], [1], [0, 0, 1, 1], [], []>} : vector<8x128xf32>, vector<128x896xf32>, vector<8x896xf32> -> vector<8x896xf32>
    %13 = arith.addf %10, %12 : vector<8x896xf32>
    %c0_14 = arith.constant 0 : index
    %c0_15 = arith.constant 0 : index
    %14 = vector.load %arg7[%c0_14, %c0_15] : memref<1x896xf32, #tpu.memory_space<vmem>>, vector<1x896xf32>
    %15 = vector.broadcast %14 : vector<1x896xf32> to vector<8x896xf32>
    %16 = arith.addf %13, %15 : vector<8x896xf32>
    %17 = vector.extract_strided_slice %16 {offsets = [0, 0], sizes = [8, 128], strides = [1, 1]} : vector<8x896xf32> to vector<8x128xf32>
    %18 = vector.extract_strided_slice %16 {offsets = [0, 128], sizes = [8, 128], strides = [1, 1]} : vector<8x896xf32> to vector<8x128xf32>
    %19 = vector.extract_strided_slice %16 {offsets = [0, 256], sizes = [8, 128], strides = [1, 1]} : vector<8x896xf32> to vector<8x128xf32>
    %20 = vector.extract_strided_slice %16 {offsets = [0, 384], sizes = [8, 128], strides = [1, 1]} : vector<8x896xf32> to vector<8x128xf32>
    %21 = vector.extract_strided_slice %16 {offsets = [0, 512], sizes = [8, 128], strides = [1, 1]} : vector<8x896xf32> to vector<8x128xf32>
    %22 = math.tanh %21 : vector<8x128xf32>
    %23 = vector.extract_strided_slice %16 {offsets = [0, 640], sizes = [8, 128], strides = [1, 1]} : vector<8x896xf32> to vector<8x128xf32>
    %24 = vector.extract_strided_slice %16 {offsets = [0, 768], sizes = [8, 128], strides = [1, 1]} : vector<8x896xf32> to vector<8x128xf32>
    %25 = arith.maximumf %18, %19 : vector<8x128xf32>
    %26 = arith.maximumf %25, %20 : vector<8x128xf32>
    %27 = arith.subf %18, %26 : vector<8x128xf32>
    %28 = math.exp %27 : vector<8x128xf32>
    %29 = arith.subf %19, %26 : vector<8x128xf32>
    %30 = math.exp %29 : vector<8x128xf32>
    %31 = arith.subf %20, %26 : vector<8x128xf32>
    %32 = math.exp %31 : vector<8x128xf32>
    %33 = arith.addf %28, %30 : vector<8x128xf32>
    %34 = arith.addf %33, %32 : vector<8x128xf32>
    %cst_16 = arith.constant 1.000000e+00 : f32
    %35 = vector.broadcast %cst_16 : f32 to vector<8x128xf32>
    %36 = arith.divf %35, %34 : vector<8x128xf32>
    %37 = arith.mulf %28, %36 : vector<8x128xf32>
    %38 = arith.mulf %30, %36 : vector<8x128xf32>
    %39 = arith.mulf %32, %36 : vector<8x128xf32>
    %40 = arith.mulf %37, %23 : vector<8x128xf32>
    %41 = arith.mulf %38, %24 : vector<8x128xf32>
    %42 = arith.addf %40, %41 : vector<8x128xf32>
    %43 = arith.mulf %39, %5 : vector<8x128xf32>
    %44 = arith.addf %42, %43 : vector<8x128xf32>
    %45 = tpu.iota {dimensions = array<i32: 1>} : vector<8x128xi32>
    %c0_17 = arith.constant 0 : index
    %c0_18 = arith.constant 0 : index
    %46 = vector.load %arg10[%c0_17, %c0_18] : memref<1x128xf32, #tpu.memory_space<vmem>>, vector<1x128xf32>
    %47 = vector.shape_cast %46 : vector<1x128xf32> to vector<1x128xf32>
    %48 = vector.broadcast %47 : vector<1x128xf32> to vector<8x128xf32>
    %c16_i32 = arith.constant 16 : i32
    %49 = vector.broadcast %c16_i32 : i32 to vector<8x128xi32>
    %50 = arith.cmpi slt, %45, %49 : vector<8x128xi32>
    %51 = arith.mulf %37, %22 : vector<8x128xf32>
    %c112_i32 = arith.constant 112 : i32
    %52 = vector.broadcast %c112_i32 : i32 to vector<8x128xi32>
    %53 = arith.cmpi sge, %45, %52 : vector<8x128xi32>
    %54 = arith.select %53, %48, %44 : vector<8x128xi1>, vector<8x128xf32>
    %55 = arith.select %50, %51, %54 : vector<8x128xi1>, vector<8x128xf32>
    %56 = math.tanh %17 : vector<8x128xf32>
    %c0_19 = arith.constant 0 : index
    %c0_20 = arith.constant 0 : index
    %57 = vector.load %arg8[%c0_19, %c0_20] : memref<128x128xf32, #tpu.memory_space<vmem>>, vector<128x128xf32>
    %cst_21 = arith.constant dense<0.000000e+00> : vector<8x128xf32>
    %58 = tpu.matmul %56, %57, %cst_21 {dimension_numbers = #tpu.dot_dimension_numbers<[1], [0], [0], [1], [0, 0, 1, 1], [], []>} : vector<8x128xf32>, vector<128x128xf32>, vector<8x128xf32> -> vector<8x128xf32>
    %c0_22 = arith.constant 0 : index
    %c0_23 = arith.constant 0 : index
    %59 = vector.load %arg9[%c0_22, %c0_23] : memref<1x128xf32, #tpu.memory_space<vmem>>, vector<1x128xf32>
    %60 = vector.broadcast %59 : vector<1x128xf32> to vector<8x128xf32>
    %61 = arith.addf %58, %60 : vector<8x128xf32>
    %cst_24 = arith.constant dense<0xFF800000> : vector<8xf32>
    %62 = vector.multi_reduction <maximumf>, %61, %cst_24 [1] : vector<8x128xf32> to vector<8xf32>
    %63 = vector.shape_cast %62 : vector<8xf32> to vector<8x1xf32>
    %64 = vector.broadcast %63 : vector<8x1xf32> to vector<8x128xf32>
    %65 = arith.subf %61, %64 : vector<8x128xf32>
    %66 = math.exp %65 : vector<8x128xf32>
    %cst_25 = arith.constant dense<0.000000e+00> : vector<8xf32>
    %67 = vector.multi_reduction <add>, %66, %cst_25 [1] : vector<8x128xf32> to vector<8xf32>
    %68 = vector.shape_cast %67 : vector<8xf32> to vector<8x1xf32>
    %69 = math.log %68 : vector<8x1xf32>
    %70 = vector.broadcast %69 : vector<8x1xf32> to vector<8x128xf32>
    %71 = arith.subf %65, %70 : vector<8x128xf32>
    %72 = tpu.iota {dimensions = array<i32: 1>} : vector<8x128xi32>
    %cst_26 = arith.constant 0.000000e+00 : f32
    %73 = vector.broadcast %cst_26 : f32 to vector<8x128xf32>
    %74 = arith.cmpf oeq, %65, %73 : vector<8x128xf32>
    %c128_i32 = arith.constant 128 : i32
    %75 = vector.broadcast %c128_i32 : i32 to vector<8x128xi32>
    %76 = arith.select %74, %72, %75 : vector<8x128xi1>, vector<8x128xi32>
    %cst_27 = arith.constant dense<2147483647> : vector<8xi32>
    %77 = vector.multi_reduction <minsi>, %76, %cst_27 [1] : vector<8x128xi32> to vector<8xi32>
    %78 = vector.shape_cast %77 : vector<8xi32> to vector<8x1xi32>
    %79 = vector.broadcast %78 : vector<8x1xi32> to vector<8x128xi32>
    %80 = arith.cmpi eq, %72, %79 : vector<8x128xi32>
    %81 = arith.extui %80 : vector<8x128xi1> to vector<8x128xi32>
    %82 = arith.sitofp %81 : vector<8x128xi32> to vector<8x128xf32>
    %c0_28 = arith.constant 0 : index
    %c0_29 = arith.constant 0 : index
    %83 = vector.load %arg14[%c0_28, %c0_29] : memref<8x128xf32, #tpu.memory_space<vmem>>, vector<8x128xf32>
    tpu.vector_store %arg14[%c0_28, %c0_29], %82 {strides = array<i32>} : memref<8x128xf32, #tpu.memory_space<vmem>>, vector<8x128xf32>,
    %c0_30 = arith.constant 0 : index
    %c0_31 = arith.constant 0 : index
    %84 = vector.load %arg15[%c0_30, %c0_31] : memref<8x128xf32, #tpu.memory_space<vmem>>, vector<8x128xf32>
    tpu.vector_store %arg15[%c0_30, %c0_31], %56 {strides = array<i32>} : memref<8x128xf32, #tpu.memory_space<vmem>>, vector<8x128xf32>,
    %c0_32 = arith.constant 0 : index
    %c0_33 = arith.constant 0 : index
    %85 = vector.load %arg16[%c0_32, %c0_33] : memref<8x128xf32, #tpu.memory_space<vmem>>, vector<8x128xf32>
    tpu.vector_store %arg16[%c0_32, %c0_33], %55 {strides = array<i32>} : memref<8x128xf32, #tpu.memory_space<vmem>>, vector<8x128xf32>,
    %c0_34 = arith.constant 0 : index
    %c0_35 = arith.constant 0 : index
    %c0_36 = arith.constant 0 : index
    %86 = vector.load %arg11[%c0_34, %c0_35, %c0_36] : memref<1x8x128xf32, #tpu.memory_space<vmem>>, vector<1x8x128xf32>
    %87 = vector.shape_cast %86 : vector<1x8x128xf32> to vector<8x128xf32>
    %88 = vector.shape_cast %71 : vector<8x128xf32> to vector<1x8x128xf32>
    tpu.vector_store %arg11[%c0_34, %c0_35, %c0_36], %88 {strides = array<i32>} : memref<1x8x128xf32, #tpu.memory_space<vmem>>, vector<1x8x128xf32>,
    %c0_37 = arith.constant 0 : index
    %c0_38 = arith.constant 0 : index
    %c0_39 = arith.constant 0 : index
    %89 = vector.load %arg12[%c0_37, %c0_38, %c0_39] : memref<1x8x128xf32, #tpu.memory_space<vmem>>, vector<1x8x128xf32>
    %90 = vector.shape_cast %89 : vector<1x8x128xf32> to vector<8x128xf32>
    %91 = vector.shape_cast %56 : vector<8x128xf32> to vector<1x8x128xf32>
    tpu.vector_store %arg12[%c0_37, %c0_38, %c0_39], %91 {strides = array<i32>} : memref<1x8x128xf32, #tpu.memory_space<vmem>>, vector<1x8x128xf32>,
    %c0_40 = arith.constant 0 : index
    %c0_41 = arith.constant 0 : index
    %c0_42 = arith.constant 0 : index
    %92 = vector.load %arg13[%c0_40, %c0_41, %c0_42] : memref<1x8x128xf32, #tpu.memory_space<vmem>>, vector<1x8x128xf32>
    %93 = vector.shape_cast %92 : vector<1x8x128xf32> to vector<8x128xf32>
    %94 = vector.shape_cast %55 : vector<8x128xf32> to vector<1x8x128xf32>
    tpu.vector_store %arg13[%c0_40, %c0_41, %c0_42], %94 {strides = array<i32>} : memref<1x8x128xf32, #tpu.memory_space<vmem>>, vector<1x8x128xf32>,
    return
  }
  func.func @transform_0(%arg0: i32) -> (i32, i32) {
    %c0_i32 = arith.constant 0 : i32
    %c0_i32_0 = arith.constant 0 : i32
    %c0_i32_1 = arith.constant 0 : i32
    return %c0_i32, %c0_i32_0 : i32, i32
  }
  func.func @transform_1(%arg0: i32) -> (i32, i32) {
    %c0_i32 = arith.constant 0 : i32
    %c0_i32_0 = arith.constant 0 : i32
    %c0_i32_1 = arith.constant 0 : i32
    return %c0_i32, %c0_i32_0 : i32, i32
  }
  func.func @transform_2(%arg0: i32) -> (i32, i32) {
    %c0_i32 = arith.constant 0 : i32
    %c0_i32_0 = arith.constant 0 : i32
    %c0_i32_1 = arith.constant 0 : i32
    return %c0_i32, %c0_i32_0 : i32, i32
  }
  func.func @transform_3(%arg0: i32) -> (i32, i32) {
    %c0_i32 = arith.constant 0 : i32
    %c0_i32_0 = arith.constant 0 : i32
    %c0_i32_1 = arith.constant 0 : i32
    return %c0_i32, %c0_i32_0 : i32, i32
  }
  func.func @transform_4(%arg0: i32) -> (i32, i32) {
    %c0_i32 = arith.constant 0 : i32
    %c0_i32_0 = arith.constant 0 : i32
    %c0_i32_1 = arith.constant 0 : i32
    return %c0_i32, %c0_i32_0 : i32, i32
  }
  func.func @transform_5(%arg0: i32) -> (i32, i32) {
    %c0_i32 = arith.constant 0 : i32
    %c0_i32_0 = arith.constant 0 : i32
    %c0_i32_1 = arith.constant 0 : i32
    return %c0_i32, %c0_i32_0 : i32, i32
  }
  func.func @transform_6(%arg0: i32) -> (i32, i32) {
    %c0_i32 = arith.constant 0 : i32
    %c0_i32_0 = arith.constant 0 : i32
    %c0_i32_1 = arith.constant 0 : i32
    return %c0_i32, %c0_i32_0 : i32, i32
  }
  func.func @transform_7(%arg0: i32) -> (i32, i32) {
    %c0_i32 = arith.constant 0 : i32
    %c0_i32_0 = arith.constant 0 : i32
    %c0_i32_1 = arith.constant 0 : i32
    return %c0_i32, %c0_i32_0 : i32, i32
  }
  func.func @transform_8(%arg0: i32) -> (i32, i32) {
    %c0_i32 = arith.constant 0 : i32
    %c0_i32_0 = arith.constant 0 : i32
    %c0_i32_1 = arith.constant 0 : i32
    return %c0_i32, %c0_i32_0 : i32, i32
  }
  func.func @transform_9(%arg0: i32) -> (i32, i32) {
    %c0_i32 = arith.constant 0 : i32
    %c0_i32_0 = arith.constant 0 : i32
    %c0_i32_1 = arith.constant 0 : i32
    return %c0_i32, %c0_i32_0 : i32, i32
  }
  func.func @transform_10(%arg0: i32) -> (i32, i32, i32) {
    %c0_i32 = arith.constant 0 : i32
    %c0_i32_0 = arith.constant 0 : i32
    %c0_i32_1 = arith.constant 0 : i32
    return %arg0, %c0_i32, %c0_i32_0 : i32, i32, i32
  }
  func.func @transform_11(%arg0: i32) -> (i32, i32, i32) {
    %c0_i32 = arith.constant 0 : i32
    %c0_i32_0 = arith.constant 0 : i32
    %c0_i32_1 = arith.constant 0 : i32
    return %arg0, %c0_i32, %c0_i32_0 : i32, i32, i32
  }
  func.func @transform_12(%arg0: i32) -> (i32, i32, i32) {
    %c0_i32 = arith.constant 0 : i32
    %c0_i32_0 = arith.constant 0 : i32
    %c0_i32_1 = arith.constant 0 : i32
    return %arg0, %c0_i32, %c0_i32_0 : i32, i32, i32
  }
}

</mosaic_0001>

<bundles_post_ra>
// kernel: decode.1
= control target key start
LH: loop header
LB: loop body
LE: loop exit
PB: predicated region body
PF: predicated region fallthrough
CT: control target
= control target key end

     0   :  { %s3472_s0 = inlined_call_operand.vmem [shape: f32[8,128], index: 0, kind: input, shape index: {}]   ;;  %s3473_s1 = inlined_call_operand.vmem [shape: f32[8,128], index: 1, kind: input, shape index: {}]   ;;  %s3474_s2 = inlined_call_operand.vmem [shape: f32[8,128], index: 2, kind: input, shape index: {}]   ;;  %s3475_s3 = inlined_call_operand.hbm [shape: f32[128,896], index: 3, kind: input, shape index: {}]   ;;  %s3476_s4 = inlined_call_operand.hbm [shape: f32[128,896], index: 4, kind: input, shape index: {}]   ;;  %s3477_s5 = inlined_call_operand.hbm [shape: f32[128,896], index: 5, kind: input, shape index: {}]   ;;  %s3478_s6 = inlined_call_operand.vmem [shape: f32[1,896], index: 6, kind: input, shape index: {}]   ;;  %s3479_s7 = inlined_call_operand.hbm [shape: f32[128,128], index: 7, kind: input, shape index: {}]   ;;  %s3480_s8 = inlined_call_operand.vmem [shape: f32[1,128], index: 8, kind: input, shape index: {}]   ;;  %s3481_s9 = inlined_call_operand.vmem [shape: f32[1,128], index: 9, kind: input, shape index: {}]   ;;  %s3482_s10 = inlined_call_operand.vmem [shape: f32[6,8,128], index: 10, kind: output, shape index: {0}]   ;;  %s3483_s11 = inlined_call_operand.hbm [shape: f32[6,8,128], index: 11, kind: output, shape index: {1}]   ;;  %s3484_s12 = inlined_call_operand.hbm [shape: f32[6,8,128], index: 12, kind: output, shape index: {2}]  }
   0x1   :  { %3496 = sst [smem:[#allocation27_spill]] %s3483_s11 }
   0x2   :  { %3497 = sst [smem:[#allocation28_spill]] %s3484_s12 }
   0x3   :  { %18 = vsyncpa [#allocation6], 0 }
   0x4   :  { %19 = vsyncpa [#allocation9], 0 }
   0x5   :  { %20 = vsyncpa [#allocation12], 0 }
   0x6   :  { %21 = vsyncpa [#allocation7], 0 }
   0x7   :  { %23 = vsyncpa [#allocation7 + $0x1], 0 }
   0x8   :  { %24 = vsyncpa [#allocation15], 0 }
   0x9   :  { %26 = vsyncpa [#allocation15 + $0x1], 0  ;;  %s3105_s21 = smov 0   ;;  %s3107_s22 = smov 0  }
   0xa   :  { %s3109_s23 = smov 0   ;;  %s3111_s24 = smov 0  }
   0xb LB: > { %3498 = sst [smem:[#allocation21_spill]] %s3013_s21  ;;  %s3126_s25 = sadd.s32 4294967295, %s3025_s24   ;;  %s3025_s24 = sphi %s3111_s24, %s3524_s24   ;;  %s3021_s23 = sphi %s3109_s23, %s3526_s23   ;;  %s3017_s22 = sphi %s3107_s22, %s3528_s22   ;;  %s3013_s21 = sphi %s3105_s21, %s3527_s21  }
   0xc   : > { %3499 = sst [smem:[#allocation22_spill]] %s3021_s23  ;;  %s2071_s26 = sadd.s32 4294967294, %s3025_s24  }
   0xd   : > { %3500 = sst [smem:[#allocation23_spill]] %s3025_s24  ;;  %s3130_s27 = sadd.s32 1, %s3025_s24  }
   0xe   : > { %3501 = sst [smem:[#allocation24_spill]] %s3130_s27  ;;  %s275_s28 = sadd.s32 1, %s3021_s23 }
   0xf   : > { %s272_s29 = ssub.s32 %s3025_s24, %s3130_s27  ;;  %p285_p0 = scmp.ne.s32.totalorder %s3021_s23, %s3017_s22 }
  0x10   : > { %p273_p1 = scmp.eq.s32.totalorder %s272_s29, 0  ;;  %p286_p2 = scmp.eq.s32.totalorder %s3126_s25, 5 }
  0x11   : > { %p291_p3 = scmp.ne.s32.totalorder %s3017_s22, %s3013_s21  ;;  %p292_p4 = scmp.eq.s32.totalorder %s2071_s26, 5 }
  0x12   : > { %s3141_s30 = scalar_select %p273_p1, %s3021_s23, %s275_s28  }
  0x13   : > { %p3143_p5 = por %p286_p2, %p285_p0  ;;  %p3147_p6 = por %p292_p4, %p291_p3 }
  0x14   : > { %3502 = sst [smem:[#allocation25_spill]] %s3141_s30  ;;  %p2072_p7 = scmp.ge.s32.totalorder %s3025_s24, 1 }
  0x15   : > { %s3503_s13 = scalar_select %p3143_p5, 1, 0 }
  0x16   : > { %s3504_s14 = scalar_select %p3147_p6, 1, 0 }
  0x17   : > { %p325_p8 = scmp.lt.s32.totalorder %s3025_s24, 7  ;;  %p3489_p10 = scmp.eq.s32.totalorder %s3126_s25, 0 }
  0x18   : > { %3505 = sst [smem:[#allocation26_spill]] %s3504_s14  ;;  %s3027_s16 = smov [#allocation8]  }
  0x19   : > { %p3155_p11 = pnand %p2072_p7, %p325_p8  ;;  %s359_s17 = sshll.u32 %s3027_s16, 4  ;;  %s3161_s17 = int_to_ptr.vmem [resolvable:$true] %s359_s17 }
  0x1a   : > { %s3028_s19 = smov [#allocation5]   ;;  %s3029_s26 = smov [#allocation10]  }
  0x1b   : > { %s3506_s15 = scalar_select %p3155_p11, 1, 0 }
  0x1c   : > { %p2719_p12 = pneg %p3155_p11  ;;  %s346_s20 = sshll.u32 %s3028_s19, 4  ;;  %s3169_s20 = int_to_ptr.vmem [resolvable:$true] %s346_s20 }
  0x1d   : > { %s3171_s28 = sshll.u32 %s3029_s26, 4  ;;  %s2807_s23 = scalar_lea.hbm %s3476_s4, 14336  ;;  %s373_s28 = int_to_ptr.vmem [resolvable:$true] %s3171_s28 }
  0x1e   : > { %p3165_p13 = pnand %p3489_p10, %p2719_p12  ;;  %p2808_p0 = scmp.ne.s32.totalorder %s3476_s4, %s2807_s23 }
  0x1f   : > { %p2814_p4 = scmp.lt.u32.totalorder %s2807_s23, %s3476_s4 }
  0x20   : > { %p3181_p1 = pneg %p3165_p13 }
  0x22   : > { %p2810_p2 = pnand %p3181_p1, %p2808_p0 }
  0x24   : > { %p2811_p3 = pneg %p2810_p2 }
  0x26   : > { %p2816_p7 = pnand %p2814_p4, %p2811_p3 }
  0x28   : > { %2819 = shalt.err (!%p2816_p7)
}
  0x29   : > { %s2820_s27 = scalar_lea.vmem %s3161_s17, 14336  ;;  %p2828_p10 = scmp.lt.s32.totalorder %s3161_s17, %s3161_s17 }
  0x2a   : > { %p2821_p8 = scmp.ne.s32.totalorder %s3161_s17, %s2820_s27  ;;  %p2829_p6 = scmp.lt.s32.totalorder %s2820_s27, %s2820_s27 }
  0x2c   : > { %p2823_p12 = pnand %p2821_p8, %p3181_p1  ;;  %p2830_p0 = por %p2829_p6, %p2828_p10 }
  0x2e   : > { %p2824_p9 = pneg %p2823_p12 }
  0x30   : > { %p2831_p2 = pnand %p2830_p0, %p2824_p9 }
  0x32   : > { %2834 = shalt.err (!%p2831_p2)
}
  0x33   : > { %s3030_s30 = smov 896   ;;  %s3031_s23 = smov 56  }
  0x34   : > { %2725 = dma.hbm_to_vmem [thread:$0]  (!%p3165_p13), %s3476_s4, 14336, %s3161_s17, [#allocation9], %s3030_s30, %s3030_s30, %s3031_s23  }
  0x35   : > { %s2835_s27 = scalar_lea.hbm %s3475_s3, 14336 }
  0x36   : > { %p2836_p6 = scmp.ne.s32.totalorder %s3475_s3, %s2835_s27  ;;  %p2842_p3 = scmp.lt.u32.totalorder %s2835_s27, %s3475_s3 }
  0x38   : > { %p2838_p9 = pnand %p2836_p6, %p3181_p1 }
  0x3a   : > { %p2839_p10 = pneg %p2838_p9 }
  0x3c   : > { %p2844_p4 = pnand %p2842_p3, %p2839_p10 }
  0x3e   : > { %2847 = shalt.err (!%p2844_p4)
}
  0x3f   : > { %s2848_s17 = scalar_lea.vmem %s3169_s20, 14336  ;;  %p2856_p0 = scmp.lt.s32.totalorder %s3169_s20, %s3169_s20 }
  0x40   : > { %p2849_p7 = scmp.ne.s32.totalorder %s3169_s20, %s2848_s17  ;;  %p2857_p2 = scmp.lt.s32.totalorder %s2848_s17, %s2848_s17 }
  0x42   : > { %p2851_p8 = pnand %p2849_p7, %p3181_p1  ;;  %p2858_p6 = por %p2857_p2, %p2856_p0 }
  0x44   : > { %p2852_p12 = pneg %p2851_p8 }
  0x46   : > { %p2859_p9 = pnand %p2858_p6, %p2852_p12 }
  0x48   : > { %2862 = shalt.err (!%p2859_p9)
}
  0x49   : > { %2722 = dma.hbm_to_vmem [thread:$0]  (!%p3165_p13), %s3475_s3, 14336, %s3169_s20, [#allocation6], %s3030_s30, %s3030_s30, %s3031_s23  }
  0x4a   : > { %s2863_s29 = scalar_lea.hbm %s3477_s5, 14336 }
  0x4b   : > { %p2864_p10 = scmp.ne.s32.totalorder %s3477_s5, %s2863_s29  ;;  %p2870_p7 = scmp.lt.u32.totalorder %s2863_s29, %s3477_s5 }
  0x4d   : > { %p2866_p3 = pnand %p2864_p10, %p3181_p1 }
  0x4f   : > { %p2867_p4 = pneg %p2866_p3 }
  0x51   : > { %p2872_p8 = pnand %p2870_p7, %p2867_p4 }
  0x53   : > { %2875 = shalt.err (!%p2872_p8)
}
  0x54   : > { %s2876_s17 = scalar_lea.vmem %s373_s28, 14336  ;;  %p2884_p6 = scmp.lt.s32.totalorder %s373_s28, %s373_s28 }
  0x55   : > { %p2877_p12 = scmp.ne.s32.totalorder %s373_s28, %s2876_s17  ;;  %p2885_p9 = scmp.lt.s32.totalorder %s2876_s17, %s2876_s17 }
  0x57   : > { %p2879_p0 = pnand %p2877_p12, %p3181_p1  ;;  %p2886_p5 = por %p2885_p9, %p2884_p6 }
  0x59   : > { %p2880_p2 = pneg %p2879_p0 }
  0x5b   : > { %p2887_p11 = pnand %p2886_p5, %p2880_p2 }
  0x5d   : > { %2890 = shalt.err (!%p2887_p11)
}
  0x5e   : > { %2728 = dma.hbm_to_vmem [thread:$0]  (!%p3165_p13), %s3477_s5, 14336, %s373_s28, [#allocation9], %s3030_s30, %s3030_s30, %s3031_s23  }
  0x5f   : > { %s3032_s12 = smov [#allocation11]   ;;  %s2891_s16 = scalar_lea.hbm %s3479_s7, 2048 }
  0x60   : > { %s388_s21 = sshll.u32 %s3032_s12, 4  ;;  %p2892_p5 = scmp.ne.s32.totalorder %s3479_s7, %s2891_s16  ;;  %s389_s21 = int_to_ptr.vmem [resolvable:$true] %s388_s21 }
  0x61   : > { %p2898_p3 = scmp.lt.u32.totalorder %s2891_s16, %s3479_s7 }
  0x62   : > { %p2894_p11 = pnand %p2892_p5, %p3181_p1 }
  0x64   : > { %p2895_p10 = pneg %p2894_p11 }
  0x66   : > { %p2900_p4 = pnand %p2898_p3, %p2895_p10 }
  0x68   : > { %2903 = shalt.err (!%p2900_p4)
}
  0x69   : > { %s2904_s28 = scalar_lea.vmem %s389_s21, 2048  ;;  %p2912_p0 = scmp.lt.s32.totalorder %s389_s21, %s389_s21 }
  0x6a   : > { %p2905_p7 = scmp.ne.s32.totalorder %s389_s21, %s2904_s28  ;;  %p2913_p2 = scmp.lt.s32.totalorder %s2904_s28, %s2904_s28 }
  0x6c   : > { %p2907_p8 = pnand %p2905_p7, %p3181_p1  ;;  %p2914_p6 = por %p2913_p2, %p2912_p0 }
  0x6e   : > { %p2908_p12 = pneg %p2907_p8 }
  0x70   : > { %p2915_p9 = pnand %p2914_p6, %p2908_p12 }
  0x72   : > { %2918 = shalt.err (!%p2915_p9)
}
  0x73   : > { %s3033_s30 = smov 128   ;;  %s3034_s23 = smov 8  }
  0x74   : > { %2731 = dma.hbm_to_vmem [thread:$0]  (!%p3165_p13), %s3479_s7, 2048, %s389_s21, [#allocation12], %s3033_s30, %s3033_s30, %s3034_s23  }
  0x75   : > { %p3509_p5 = scmp.ne.s32.totalorder %s3506_s15, 0 }
  0x76   : > { %p3510_p11 = scmp.eq.s32.totalorder (!%p3509_p5), %s3126_s25, 0 }
  0x77   : > { %410 = sbr.rel (%p3509_p5) target bundleno = 1190 (0x4a6), region = 60 }
  0x7e   : > { %2992 = dma.done.wait (%p3510_p11), [#allocation6], 14336   ;;  %p3511_p1 = pmov %p3510_p11 }
  0x80   : > { %2994 = vsyncadd (%p3511_p1), [#allocation6], 4294952960  ;;  %p3512_p10 = pmov %p3511_p1 }
  0x81   : > { %p3513_p3 = pmov %p3511_p1 }
  0x82   : > { %2996 = dma.done.wait (%p3512_p10), [#allocation9], 28672  }
  0x83   : > { %2998 = vsyncadd (%p3513_p3), [#allocation9], 4294938624  ;;  %p3514_p4 = pmov %p3511_p1 }
  0x84   : > { %p3515_p13 = pmov %p3511_p1 }
  0x85   : > { %3000 = dma.done.wait (%p3514_p4), [#allocation12], 2048  }
  0x86   : > { %3002 = vsyncadd (%p3515_p13), [#allocation12], 4294965248  ;;  %s3286_s14 = sand.u32 1, %s3017_s22   ;;  %p468_p7 = scmp.lt.s32.totalorder %s3126_s25, 5 }
  0x87   : > { %s2082_s15 = sshll.u32 %s3286_s14, 3  ;;  %p3516_p8 = scmp.ne.s32.totalorder %s3126_s25, 0 }
  0x88   : > { %s469_s18 = scalar_select %p468_p7, %s3126_s25, 5 }
  0x89   : > { %s3296_s16 = scalar_lea.vmem [#allocation13], %s2082_s15  ;;  %s3298_s19 = scalar_lea.vmem [#allocation14], %s2082_s15  ;;  %v476_v0 = vld [vmem:[%s3472_s0] sm:$0xff] (!%p3516_p8) }
  0x8a   : > { %s2084_s12 = sshll.u32 %s469_s18, 3  ;;  %475 = sbr.rel (%p3516_p8) target bundleno = 145 (0x91), region = 80  ;;  %v478_v1 = vld [vmem:[%s3473_s1] sm:$0xff] (!%p3516_p8)  ;;  %477 = vst [vmem:[#allocation2] sm:$0xff] (!%p3516_p8), %v476_v0 }
  0x8b   : > { %s3294_s29 = scalar_lea.vmem %s3482_s10, %s2084_s12  ;;  %v480_v2 = vld [vmem:[%s3474_s2] sm:$0xff] (!%p3516_p8)  ;;  %479 = vst [vmem:[#allocation3] sm:$0xff] (!%p3516_p8), %v478_v1 }
  0x8c   : > { %481 = vst [vmem:[#allocation4] sm:$0xff] (!%p3516_p8), %v480_v2 }
  0x91 PF: > { %v598_v3 = vld [vmem:[#allocation8 + $0x8] sm:$0xff]  ;;  %v605_v4 = vld [vmem:[#allocation8 + $0x40] sm:$0xff]  ;;  %v604_v7 = vld [vmem:[#allocation8 + $0x38] sm:$0xff]  ;;  %v3035_v10 = vmov 0.0   ;;  %vm3037_vm0 = vmmov 0   ;;  %s2091_s24 = sshll.u32 %s3126_s25, 7 }
  0x92   : > { %v597_v5 = vld [vmem:[#allocation8] sm:$0xff]  ;;  %v2303_v6 = vpack.c.bf16 %v605_v4, %v598_v3  ;;  %v600_v8 = vld [vmem:[#allocation8 + $0x18] sm:$0xff]  ;;  %v607_v9 = vld [vmem:[#allocation8 + $0x50] sm:$0xff]  ;;  %773 = vmatprep.mubr.f32.mxu0 %v3035_v10  ;;  %844 = vmatprep.mubr.f32.mxu1 %v3035_v10  ;;  %s3517_s17 = sld [smem:[#allocation27_spill]]  ;;  %s1914_s30 = sshll.u32 %s3296_s16, 4  ;;  %s1915_s30 = int_to_ptr.vmem [resolvable:$true] %s1914_s30 }
  0x93   : > { %v2305_v11 = vpack.c.bf16 %v604_v7, %v597_v5  ;;  %v2335_v12 = vpack.c.bf16 %v607_v9, %v600_v8  ;;  %v599_v13 = vld [vmem:[#allocation8 + $0x10] sm:$0xff]  ;;  %v606_v14 = vld [vmem:[#allocation8 + $0x48] sm:$0xff]  ;;  %v612_v15 = vld [vmem:[#allocation8 + $0x78] sm:$0xff]  ;;  %s1893_s23 = scalar_lea.sflag [#allocation7], %s3286_s14  ;;  %s2919_s20 = scalar_lea.vmem %s1915_s30, 128 }
  0x94   : > { %2304 = vmatprep.subr.bf16.mxu0 %v2303_v6  ;;  %v2337_v16 = vpack.c.bf16 %v606_v14, %v599_v13  ;;  %v619_v17 = vld [vmem:[#allocation8 + $0xb0] sm:$0xff]  ;;  %v618_v19 = vld [vmem:[#allocation8 + $0xa8] sm:$0xff]  ;;  %v621_v23 = vld [vmem:[#allocation8 + $0xc0] sm:$0xff]  ;;  %p2920_p12 = scmp.ne.s32.totalorder %s1915_s30, %s2919_s20  ;;  %p3518_p0 = scmp.ne.s32.totalorder %s3503_s13, 0 }
  0x95   : > { %v611_v18 = vld [vmem:[#allocation8 + $0x70] sm:$0xff]  ;;  %2306 = vmatpush1.bf16.msra.mxu0 %v2305_v11  ;;  %2336 = vmatprep.subr.bf16.mxu1 %v2335_v12  ;;  %v2307_v20 = vpack.c.bf16 %v619_v17, %v612_v15  ;;  %v614_v22 = vld [vmem:[#allocation8 + $0x88] sm:$0xff]  ;;  %v613_v24 = vld [vmem:[#allocation8 + $0x80] sm:$0xff]  ;;  %s3038_s11 = smov [#allocation13]  }
  0x96   : > { %v2309_v21 = vpack.c.bf16 %v618_v19, %v611_v18  ;;  %2338 = vmatpush1.bf16.msra.mxu1 %v2337_v16  ;;  %v2339_v25 = vpack.c.bf16 %v621_v23, %v614_v22  ;;  %v620_v26 = vld [vmem:[#allocation8 + $0xb8] sm:$0xff]  ;;  %v626_v27 = vld [vmem:[#allocation8 + $0xe8] sm:$0xff]  ;;  %v633_v28 = vld [vmem:[#allocation8 + $0x120] sm:$0xff]  ;;  %p2921_p2 = pnand %p2920_p12, %p3518_p0  ;;  %s2923_s15 = sshll.u32 %s3038_s11, 4  ;;  %s2924_s15 = int_to_ptr.vmem [resolvable:$false] %s2923_s15 }
  0x97   : > { %2308 = vmatprep.subr.bf16.mxu0 %v2307_v20  ;;  %v2341_v29 = vpack.c.bf16 %v620_v26, %v613_v24  ;;  %v2311_v30 = vpack.c.bf16 %v633_v28, %v626_v27  ;;  %v625_v31 = vld [vmem:[#allocation8 + $0xe0] sm:$0xff]  ;;  %v632_v32 = vld [vmem:[#allocation8 + $0x118] sm:$0xff]  ;;  %v635_v34 = vld [vmem:[#allocation8 + $0x130] sm:$0xff]  ;;  %s2925_s18 = scalar_lea.vmem %s2924_s15, 256  ;;  %p2926_p9 = scmp.lt.s32.totalorder %s1915_s30, %s2924_s15 }
  0x98   : > { %v628_v33 = vld [vmem:[#allocation8 + $0xf8] sm:$0xff]  ;;  %2340 = vmatprep.subr.bf16.mxu1 %v2339_v25  ;;  %v627_v35 = vld [vmem:[#allocation8 + $0xf0] sm:$0xff]  ;;  %v634_v36 = vld [vmem:[#allocation8 + $0x128] sm:$0xff]  ;;  %v2313_v37 = vpack.c.bf16 %v632_v32, %v625_v31  ;;  %s3405_s28 = scalar_lea.hbm %s3517_s17, %s2091_s24  ;;  %p2922_p6 = pneg %p2921_p2 }
  0x99   : > { %2310 = vmatpush1.bf16.msra.mxu0 %v2309_v21  ;;  %v2343_v38 = vpack.c.bf16 %v635_v34, %v628_v33  ;;  %v640_v39 = vld [vmem:[#allocation8 + $0x158] sm:$0xff]  ;;  %v647_v40 = vld [vmem:[#allocation8 + $0x190] sm:$0xff]  ;;  %v2345_v42 = vpack.c.bf16 %v634_v36, %v627_v35  ;;  %v646_v44 = vld [vmem:[#allocation8 + $0x188] sm:$0xff]  ;;  %p2927_p5 = scmp.lt.s32.totalorder %s2925_s18, %s2919_s20 }
  0x9a   : > { %v639_v41 = vld [vmem:[#allocation8 + $0x150] sm:$0xff]  ;;  %2342 = vmatpush1.bf16.msra.mxu1 %v2341_v29  ;;  %2312 = vmatprep.subr.bf16.mxu0 %v2311_v30  ;;  %v2315_v43 = vpack.c.bf16 %v647_v40, %v640_v39  ;;  %v642_v45 = vld [vmem:[#allocation8 + $0x168] sm:$0xff]  ;;  %v649_v46 = vld [vmem:[#allocation8 + $0x1a0] sm:$0xff] }
  0x9b   : > { %2344 = vmatprep.subr.bf16.mxu1 %v2343_v38  ;;  %v2347_v47 = vpack.c.bf16 %v649_v46, %v642_v45  ;;  %v641_v48 = vld [vmem:[#allocation8 + $0x160] sm:$0xff]  ;;  %v648_v49 = vld [vmem:[#allocation8 + $0x198] sm:$0xff]  ;;  %v654_v50 = vld [vmem:[#allocation8 + $0x1c8] sm:$0xff]  ;;  %v2317_v52 = vpack.c.bf16 %v646_v44, %v639_v41  ;;  %p2928_p11 = por %p2927_p5, %p2926_p9 }
  0x9c   : > { %v661_v51 = vld [vmem:[#allocation8 + $0x200] sm:$0xff]  ;;  %v656_v53 = vld [vmem:[#allocation8 + $0x1d8] sm:$0xff]  ;;  %v663_v54 = vld [vmem:[#allocation8 + $0x210] sm:$0xff]  ;;  %v2349_v55 = vpack.c.bf16 %v648_v49, %v641_v48 }
  0x9d   : > { %2314 = vmatpush1.bf16.msra.mxu0 %v2313_v37  ;;  %v2319_v56 = vpack.c.bf16 %v661_v51, %v654_v50  ;;  %v653_v57 = vld [vmem:[#allocation8 + $0x1c0] sm:$0xff]  ;;  %v660_v58 = vld [vmem:[#allocation8 + $0x1f8] sm:$0xff]  ;;  %v655_v59 = vld [vmem:[#allocation8 + $0x1d0] sm:$0xff]  ;;  %v2351_v60 = vpack.c.bf16 %v663_v54, %v656_v53  ;;  %v3036_v53 = vmov 0.0|0.0   ;;  %p2929_p1 = pnand %p2928_p11, %p2922_p6 }
  0x9e   : > { %2346 = vmatpush1.bf16.msra.mxu1 %v2345_v42  ;;  %2316 = vmatprep.subr.bf16.mxu0 %v2315_v43  ;;  %v662_v61 = vld [vmem:[#allocation8 + $0x208] sm:$0xff]  ;;  %v668_v62 = vld [vmem:[#allocation8 + $0x238] sm:$0xff]  ;;  %v675_v63 = vld [vmem:[#allocation8 + $0x270] sm:$0xff]  ;;  %v2321_v2 = vpack.c.bf16 %v660_v58, %v653_v57 }
  0x9f   : > { %2348 = vmatprep.subr.bf16.mxu1 %v2347_v47  ;;  %v670_v0 = vld [vmem:[#allocation8 + $0x248] sm:$0xff]  ;;  %v677_v1 = vld [vmem:[#allocation8 + $0x280] sm:$0xff]  ;;  %v2353_v3 = vpack.c.bf16 %v662_v61, %v655_v59  ;;  %v2323_v4 = vpack.c.bf16 %v675_v63, %v668_v62  ;;  %v667_v5 = vld [vmem:[#allocation8 + $0x230] sm:$0xff] }
  0xa0   : > { %v674_v6 = vld [vmem:[#allocation8 + $0x268] sm:$0xff]  ;;  %v669_v7 = vld [vmem:[#allocation8 + $0x240] sm:$0xff]  ;;  %v2355_v8 = vpack.c.bf16 %v677_v1, %v670_v0  ;;  %v676_v9 = vld [vmem:[#allocation8 + $0x278] sm:$0xff] }
  0xa1   : > { %2318 = vmatpush1.bf16.msra.mxu0 %v2317_v52  ;;  %v682_v11 = vld [vmem:[#allocation8 + $0x2a8] sm:$0xff]  ;;  %v689_v12 = vld [vmem:[#allocation8 + $0x2e0] sm:$0xff]  ;;  %v684_v13 = vld [vmem:[#allocation8 + $0x2b8] sm:$0xff]  ;;  %v2325_v15 = vpack.c.bf16 %v674_v6, %v667_v5  ;;  %v2357_v16 = vpack.c.bf16 %v676_v9, %v669_v7 }
  0xa2   : > { %2350 = vmatpush1.bf16.msra.mxu1 %v2349_v55  ;;  %2320 = vmatprep.subr.bf16.mxu0 %v2319_v56  ;;  %v691_v14 = vld [vmem:[#allocation8 + $0x2f0] sm:$0xff]  ;;  %v2327_v17 = vpack.c.bf16 %v689_v12, %v682_v11  ;;  %v681_v18 = vld [vmem:[#allocation8 + $0x2a0] sm:$0xff]  ;;  %v688_v19 = vld [vmem:[#allocation8 + $0x2d8] sm:$0xff] }
  0xa3   : > { %2352 = vmatprep.subr.bf16.mxu1 %v2351_v60  ;;  %v683_v20 = vld [vmem:[#allocation8 + $0x2b0] sm:$0xff]  ;;  %v2359_v21 = vpack.c.bf16 %v691_v14, %v684_v13  ;;  %v690_v22 = vld [vmem:[#allocation8 + $0x2e8] sm:$0xff]  ;;  %v696_v23 = vld [vmem:[#allocation8 + $0x318] sm:$0xff]  ;;  %v2329_v27 = vpack.c.bf16 %v688_v19, %v681_v18 }
  0xa4   : > { %v703_v24 = vld [vmem:[#allocation8 + $0x350] sm:$0xff]  ;;  %v698_v25 = vld [vmem:[#allocation8 + $0x328] sm:$0xff]  ;;  %v705_v26 = vld [vmem:[#allocation8 + $0x360] sm:$0xff]  ;;  %v2361_v28 = vpack.c.bf16 %v690_v22, %v683_v20 }
  0xa5   : > { %2322 = vmatpush1.bf16.msra.mxu0 %v2321_v2  ;;  %v2331_v29 = vpack.c.bf16 %v703_v24, %v696_v23  ;;  %v695_v30 = vld [vmem:[#allocation8 + $0x310] sm:$0xff]  ;;  %v702_v31 = vld [vmem:[#allocation8 + $0x348] sm:$0xff]  ;;  %v697_v32 = vld [vmem:[#allocation8 + $0x320] sm:$0xff]  ;;  %v2363_v33 = vpack.c.bf16 %v705_v26, %v698_v25 }
  0xa6   : > { %2354 = vmatpush1.bf16.msra.mxu1 %v2353_v3  ;;  %2324 = vmatprep.subr.bf16.mxu0 %v2323_v4  ;;  %v704_v34 = vld [vmem:[#allocation8 + $0x358] sm:$0xff]  ;;  %v602_v35 = vld [vmem:[#allocation8 + $0x28] sm:$0xff]  ;;  %v609_v36 = vld [vmem:[#allocation8 + $0x60] sm:$0xff]  ;;  %v2333_v37 = vpack.c.bf16 %v702_v31, %v695_v30 }
  0xa7   : > { %2356 = vmatprep.subr.bf16.mxu1 %v2355_v8  ;;  %v2365_v38 = vpack.c.bf16 %v704_v34, %v697_v32  ;;  %v2367_v39 = vpack.c.bf16 %v609_v36, %v602_v35  ;;  %v601_v40 = vld [vmem:[#allocation8 + $0x20] sm:$0xff]  ;;  %v608_v41 = vld [vmem:[#allocation8 + $0x58] sm:$0xff]  ;;  %v603_v42 = vld [vmem:[#allocation8 + $0x30] sm:$0xff] }
  0xa8   : > { %v610_v43 = vld [vmem:[#allocation8 + $0x68] sm:$0xff]  ;;  %v616_v44 = vld [vmem:[#allocation8 + $0x98] sm:$0xff]  ;;  %v623_v45 = vld [vmem:[#allocation8 + $0xd0] sm:$0xff]  ;;  %v2369_v47 = vpack.c.bf16 %v608_v41, %v601_v40 }
  0xa9   : > { %2326 = vmatpush1.bf16.msra.mxu0 %v2325_v15  ;;  %v3313_v46 = vld [vmem:[#allocation3] sm:$0xff]  ;;  %v2400_v48 = vpack.c.bf16 %v610_v43, %v603_v42  ;;  %v2371_v49 = vpack.c.bf16 %v623_v45, %v616_v44  ;;  %v622_v51 = vld [vmem:[#allocation8 + $0xc8] sm:$0xff]  ;;  %v617_v52 = vld [vmem:[#allocation8 + $0xa0] sm:$0xff] }
  0xaa   : > { %2358 = vmatpush1.bf16.msra.mxu1 %v2357_v16  ;;  %2328 = vmatprep.subr.bf16.mxu0 %v2327_v17  ;;  %v615_v50 = vld [vmem:[#allocation8 + $0x90] sm:$0xff]  ;;  %v624_v54 = vld [vmem:[#allocation8 + $0xd8] sm:$0xff]  ;;  %v630_v55 = vld [vmem:[#allocation8 + $0x108] sm:$0xff] }
  0xab   : > { %2360 = vmatprep.subr.bf16.mxu1 %v2359_v21  ;;  %v637_v56 = vld [vmem:[#allocation8 + $0x140] sm:$0xff]  ;;  %v2373_v57 = vpack.c.bf16 %v622_v51, %v615_v50  ;;  %v2403_v58 = vpack.c.bf16 %v624_v54, %v617_v52  ;;  %v636_v61 = vld [vmem:[#allocation8 + $0x138] sm:$0xff]  ;;  %v631_v62 = vld [vmem:[#allocation8 + $0x110] sm:$0xff] }
  0xac   : > { %v2375_v59 = vpack.c.bf16 %v637_v56, %v630_v55  ;;  %v629_v60 = vld [vmem:[#allocation8 + $0x100] sm:$0xff]  ;;  %v638_v63 = vld [vmem:[#allocation8 + $0x148] sm:$0xff]  ;;  %v644_v0 = vld [vmem:[#allocation8 + $0x178] sm:$0xff] }
  0xad   : > { %2330 = vmatpush1.bf16.msra.mxu0 %v2329_v27  ;;  %v651_v1 = vld [vmem:[#allocation8 + $0x1b0] sm:$0xff]  ;;  %v2377_v2 = vpack.c.bf16 %v636_v61, %v629_v60  ;;  %v2406_v3 = vpack.c.bf16 %v638_v63, %v631_v62  ;;  %v650_v6 = vld [vmem:[#allocation8 + $0x1a8] sm:$0xff]  ;;  %v645_v7 = vld [vmem:[#allocation8 + $0x180] sm:$0xff] }
  0xae   : > { %2362 = vmatpush1.bf16.msra.mxu1 %v2361_v28  ;;  %2332 = vmatprep.subr.bf16.mxu0 %v2331_v29  ;;  %v2379_v4 = vpack.c.bf16 %v651_v1, %v644_v0  ;;  %v643_v5 = vld [vmem:[#allocation8 + $0x170] sm:$0xff]  ;;  %v652_v8 = vld [vmem:[#allocation8 + $0x1b8] sm:$0xff]  ;;  %v658_v9 = vld [vmem:[#allocation8 + $0x1e8] sm:$0xff] }
  0xaf   : > { %2364 = vmatprep.subr.bf16.mxu1 %v2363_v33  ;;  %v665_v11 = vld [vmem:[#allocation8 + $0x220] sm:$0xff]  ;;  %v2381_v12 = vpack.c.bf16 %v650_v6, %v643_v5  ;;  %v2409_v13 = vpack.c.bf16 %v652_v8, %v645_v7  ;;  %v664_v16 = vld [vmem:[#allocation8 + $0x218] sm:$0xff]  ;;  %v659_v17 = vld [vmem:[#allocation8 + $0x1f0] sm:$0xff] }
  0xb0   : > { %v2383_v14 = vpack.c.bf16 %v665_v11, %v658_v9  ;;  %v657_v15 = vld [vmem:[#allocation8 + $0x1e0] sm:$0xff]  ;;  %v666_v18 = vld [vmem:[#allocation8 + $0x228] sm:$0xff]  ;;  %v672_v19 = vld [vmem:[#allocation8 + $0x258] sm:$0xff] }
  0xb1   : > { %2334 = vmatpush1.bf16.msra.mxu0 %v2333_v37  ;;  %v679_v20 = vld [vmem:[#allocation8 + $0x290] sm:$0xff]  ;;  %v2385_v21 = vpack.c.bf16 %v664_v16, %v657_v15  ;;  %v2412_v22 = vpack.c.bf16 %v666_v18, %v659_v17  ;;  %v678_v25 = vld [vmem:[#allocation8 + $0x288] sm:$0xff]  ;;  %v673_v26 = vld [vmem:[#allocation8 + $0x260] sm:$0xff] }
  0xb2   : > { %2366 = vmatpush1.bf16.msra.mxu1 %v2365_v38  ;;  %2368 = vmatprep.subr.bf16.mxu0 %v2367_v39  ;;  %v2387_v23 = vpack.c.bf16 %v679_v20, %v672_v19  ;;  %v671_v24 = vld [vmem:[#allocation8 + $0x250] sm:$0xff]  ;;  %v680_v27 = vld [vmem:[#allocation8 + $0x298] sm:$0xff]  ;;  %v686_v28 = vld [vmem:[#allocation8 + $0x2c8] sm:$0xff] }
  0xb3   : > { %2399 = vmatprep.subr.bf16.mxu1 %v3036_v53  ;;  %v693_v29 = vld [vmem:[#allocation8 + $0x300] sm:$0xff]  ;;  %v2389_v30 = vpack.c.bf16 %v678_v25, %v671_v24  ;;  %v2415_v31 = vpack.c.bf16 %v680_v27, %v673_v26  ;;  %v692_v34 = vld [vmem:[#allocation8 + $0x2f8] sm:$0xff]  ;;  %v687_v35 = vld [vmem:[#allocation8 + $0x2d0] sm:$0xff] }
  0xb4   : > { %774 = vmatmul.mubr.f32.vlgmr.msra.gmra.mrb[0].mxu0 %v3313_v46  ;;  %v2391_v32 = vpack.c.bf16 %v693_v29, %v686_v28  ;;  %v685_v33 = vld [vmem:[#allocation8 + $0x2c0] sm:$0xff]  ;;  %v694_v36 = vld [vmem:[#allocation8 + $0x308] sm:$0xff]  ;;  %v700_v37 = vld [vmem:[#allocation8 + $0x338] sm:$0xff] }
  0xb5   : > { %2370 = vmatpush1.bf16.msra.mxu0 %v2369_v47  ;;  %845 = vmatmul.mubr.f32.vlgmr.msra.gmra.mrb[0].mxu1 %v3313_v46  ;;  %v707_v38 = vld [vmem:[#allocation8 + $0x370] sm:$0xff]  ;;  %v2393_v39 = vpack.c.bf16 %v692_v34, %v685_v33  ;;  %v2418_v40 = vpack.c.bf16 %v694_v36, %v687_v35  ;;  %v706_v43 = vld [vmem:[#allocation8 + $0x368] sm:$0xff]  ;;  %v701_v44 = vld [vmem:[#allocation8 + $0x340] sm:$0xff] }
  0xb6   : > { %2401 = vmatpush3.bf16.msra.mxu1 %v2400_v48  ;;  %2372 = vmatprep.subr.bf16.mxu0 %v2371_v49  ;;  %v2395_v41 = vpack.c.bf16 %v707_v38, %v700_v37  ;;  %v699_v42 = vld [vmem:[#allocation8 + $0x330] sm:$0xff]  ;;  %v708_v45 = vld [vmem:[#allocation8 + $0x378] sm:$0xff]  ;;  %v486_v47 = vld [vmem:[#allocation5 + $0x8] sm:$0xff] }
  0xb7   : > { %2402 = vmatprep.subr.bf16.mxu1 %v3036_v53  ;;  %915 = vmatprep.mubr.f32.mxu0 %v3035_v10  ;;  %v493_v48 = vld [vmem:[#allocation5 + $0x40] sm:$0xff]  ;;  %v488_v49 = vld [vmem:[#allocation5 + $0x18] sm:$0xff]  ;;  %v495_v50 = vld [vmem:[#allocation5 + $0x50] sm:$0xff]  ;;  %v2397_v51 = vpack.c.bf16 %v706_v43, %v699_v42  ;;  %v2421_v52 = vpack.c.bf16 %v708_v45, %v701_v44 }
  0xb8   : > { %2195 = vmatprep.mubr.msk.f32.mxu1 %vm3037_vm0, %v3035_v10  ;;  %v2423_v54 = vpack.c.bf16 %v493_v48, %v486_v47  ;;  %v485_v55 = vld [vmem:[#allocation5] sm:$0xff]  ;;  %v492_v56 = vld [vmem:[#allocation5 + $0x38] sm:$0xff]  ;;  %v507_v61 = vld [vmem:[#allocation5 + $0xb0] sm:$0xff] }
  0xb9   : > { %2374 = vmatpush1.bf16.msra.mxu0 %v2373_v57  ;;  %v487_v57 = vld [vmem:[#allocation5 + $0x10] sm:$0xff]  ;;  %v500_v60 = vld [vmem:[#allocation5 + $0x78] sm:$0xff]  ;;  %v502_v62 = vld [vmem:[#allocation5 + $0x88] sm:$0xff]  ;;  %v2425_v0 = vpack.c.bf16 %v492_v56, %v485_v55 }
  0xba   : > { %2404 = vmatpush3.bf16.msra.mxu1 %v2403_v58  ;;  %2376 = vmatprep.subr.bf16.mxu0 %v2375_v59  ;;  %v2455_v58 = vpack.c.bf16 %v495_v50, %v488_v49  ;;  %v494_v59 = vld [vmem:[#allocation5 + $0x48] sm:$0xff]  ;;  %v509_v63 = vld [vmem:[#allocation5 + $0xc0] sm:$0xff]  ;;  %v508_v7 = vld [vmem:[#allocation5 + $0xb8] sm:$0xff] }
  0xbb   : > { %2405 = vmatprep.subr.bf16.mxu1 %v3036_v53  ;;  %v2457_v1 = vpack.c.bf16 %v494_v59, %v487_v57  ;;  %v501_v5 = vld [vmem:[#allocation5 + $0x80] sm:$0xff]  ;;  %v2459_v6 = vpack.c.bf16 %v509_v63, %v502_v62  ;;  %v514_v8 = vld [vmem:[#allocation5 + $0xe8] sm:$0xff]  ;;  %v516_v11 = vld [vmem:[#allocation5 + $0xf8] sm:$0xff] }
  0xbc   : > { %v521_v9 = vld [vmem:[#allocation5 + $0x120] sm:$0xff]  ;;  %v520_v17 = vld [vmem:[#allocation5 + $0x118] sm:$0xff]  ;;  %v515_v18 = vld [vmem:[#allocation5 + $0xf0] sm:$0xff] }
  0xbd   : > { %2378 = vmatpush1.bf16.msra.mxu0 %v2377_v2  ;;  %v2427_v2 = vpack.c.bf16 %v507_v61, %v500_v60  ;;  %v2431_v15 = vpack.c.bf16 %v521_v9, %v514_v8  ;;  %v513_v16 = vld [vmem:[#allocation5 + $0xe0] sm:$0xff]  ;;  %v522_v20 = vld [vmem:[#allocation5 + $0x128] sm:$0xff]  ;;  %v527_v27 = vld [vmem:[#allocation5 + $0x150] sm:$0xff] }
  0xbe   : > { %2407 = vmatpush3.bf16.msra.mxu1 %v2406_v3  ;;  %2380 = vmatprep.subr.bf16.mxu0 %v2379_v4  ;;  %v499_v3 = vld [vmem:[#allocation5 + $0x70] sm:$0xff]  ;;  %v506_v4 = vld [vmem:[#allocation5 + $0xa8] sm:$0xff]  ;;  %v537_v24 = vld [vmem:[#allocation5 + $0x1a0] sm:$0xff]  ;;  %v2465_v25 = vpack.c.bf16 %v522_v20, %v515_v18 }
  0xbf   : > { %2408 = vmatprep.subr.bf16.mxu1 %v3036_v53  ;;  %v534_v28 = vld [vmem:[#allocation5 + $0x188] sm:$0xff]  ;;  %v529_v29 = vld [vmem:[#allocation5 + $0x160] sm:$0xff]  ;;  %v544_v34 = vld [vmem:[#allocation5 + $0x1d8] sm:$0xff] }
  0xc0   : > { %v549_v33 = vld [vmem:[#allocation5 + $0x200] sm:$0xff]  ;;  %v551_v35 = vld [vmem:[#allocation5 + $0x210] sm:$0xff]  ;;  %v2437_v36 = vpack.c.bf16 %v534_v28, %v527_v27  ;;  %v550_v43 = vld [vmem:[#allocation5 + $0x208] sm:$0xff] }
  0xc1   : > { %2382 = vmatpush1.bf16.msra.mxu0 %v2381_v12  ;;  %v523_v12 = vld [vmem:[#allocation5 + $0x130] sm:$0xff]  ;;  %v2471_v42 = vpack.c.bf16 %v551_v35, %v544_v34  ;;  %v556_v44 = vld [vmem:[#allocation5 + $0x238] sm:$0xff]  ;;  %v558_v47 = vld [vmem:[#allocation5 + $0x248] sm:$0xff] }
  0xc2   : > { %2410 = vmatpush3.bf16.msra.mxu1 %v2409_v13  ;;  %2384 = vmatprep.subr.bf16.mxu0 %v2383_v14  ;;  %v2429_v13 = vpack.c.bf16 %v506_v4, %v499_v3  ;;  %v2461_v14 = vpack.c.bf16 %v508_v7, %v501_v5  ;;  %v2463_v19 = vpack.c.bf16 %v523_v12, %v516_v11  ;;  %v563_v45 = vld [vmem:[#allocation5 + $0x270] sm:$0xff]  ;;  %v565_v48 = vld [vmem:[#allocation5 + $0x280] sm:$0xff]  ;;  %v564_v57 = vld [vmem:[#allocation5 + $0x278] sm:$0xff] }
  0xc3   : > { %2411 = vmatprep.subr.bf16.mxu1 %v3036_v53  ;;  %v557_v55 = vld [vmem:[#allocation5 + $0x240] sm:$0xff]  ;;  %v2475_v56 = vpack.c.bf16 %v565_v48, %v558_v47  ;;  %v572_v60 = vld [vmem:[#allocation5 + $0x2b8] sm:$0xff]  ;;  %v579_v61 = vld [vmem:[#allocation5 + $0x2f0] sm:$0xff] }
  0xc4   : > { %v577_v59 = vld [vmem:[#allocation5 + $0x2e0] sm:$0xff]  ;;  %v2477_v63 = vpack.c.bf16 %v564_v57, %v557_v55  ;;  %v571_v3 = vld [vmem:[#allocation5 + $0x2b0] sm:$0xff]  ;;  %v2479_v4 = vpack.c.bf16 %v579_v61, %v572_v60  ;;  %v578_v5 = vld [vmem:[#allocation5 + $0x2e8] sm:$0xff] }
  0xc5   : > { %2386 = vmatpush1.bf16.msra.mxu0 %v2385_v21  ;;  %v528_v21 = vld [vmem:[#allocation5 + $0x158] sm:$0xff]  ;;  %v591_v7 = vld [vmem:[#allocation5 + $0x350] sm:$0xff]  ;;  %v586_v8 = vld [vmem:[#allocation5 + $0x328] sm:$0xff]  ;;  %v2481_v12 = vpack.c.bf16 %v578_v5, %v571_v3 }
  0xc6   : > { %2413 = vmatpush3.bf16.msra.mxu1 %v2412_v22  ;;  %2388 = vmatprep.subr.bf16.mxu0 %v2387_v23  ;;  %v535_v22 = vld [vmem:[#allocation5 + $0x190] sm:$0xff]  ;;  %v530_v23 = vld [vmem:[#allocation5 + $0x168] sm:$0xff]  ;;  %v593_v9 = vld [vmem:[#allocation5 + $0x360] sm:$0xff] }
  0xc7   : > { %2414 = vmatprep.subr.bf16.mxu1 %v3036_v53  ;;  %v2435_v26 = vpack.c.bf16 %v535_v22, %v528_v21  ;;  %v592_v18 = vld [vmem:[#allocation5 + $0x358] sm:$0xff]  ;;  %v497_v20 = vld [vmem:[#allocation5 + $0x60] sm:$0xff]  ;;  %v511_v28 = vld [vmem:[#allocation5 + $0xd0] sm:$0xff] }
  0xc8   : > { %v504_v27 = vld [vmem:[#allocation5 + $0x98] sm:$0xff]  ;;  %v510_v34 = vld [vmem:[#allocation5 + $0xc8] sm:$0xff]  ;;  %v505_v35 = vld [vmem:[#allocation5 + $0xa0] sm:$0xff] }
  0xc9   : > { %2390 = vmatpush1.bf16.msra.mxu0 %v2389_v30  ;;  %v2467_v30 = vpack.c.bf16 %v537_v24, %v530_v23  ;;  %v489_v24 = vld [vmem:[#allocation5 + $0x20] sm:$0xff]  ;;  %v532_v47 = vld [vmem:[#allocation5 + $0x178] sm:$0xff]  ;;  %v539_v48 = vld [vmem:[#allocation5 + $0x1b0] sm:$0xff] }
  0xca   : > { %2416 = vmatpush3.bf16.msra.mxu1 %v2415_v31  ;;  %2392 = vmatprep.subr.bf16.mxu0 %v2391_v32  ;;  %v536_v31 = vld [vmem:[#allocation5 + $0x198] sm:$0xff]  ;;  %v542_v32 = vld [vmem:[#allocation5 + $0x1c8] sm:$0xff]  ;;  %v533_v55 = vld [vmem:[#allocation5 + $0x180] sm:$0xff] }
  0xcb   : > { %2417 = vmatprep.subr.bf16.mxu1 %v3036_v53  ;;  %v2469_v37 = vpack.c.bf16 %v536_v31, %v529_v29  ;;  %v2439_v38 = vpack.c.bf16 %v549_v33, %v542_v32  ;;  %v3332_v29 = vld [vmem:[#allocation2] sm:$0xff]  ;;  %v2491_v32 = vpack.c.bf16 %v511_v28, %v504_v27  ;;  %v503_v33 = vld [vmem:[#allocation5 + $0x90] sm:$0xff]  ;;  %v589_v27 = vld [vmem:[#allocation5 + $0x340] sm:$0xff] }
  0xcc   : > { %v546_v57 = vld [vmem:[#allocation5 + $0x1e8] sm:$0xff]  ;;  %v567_v3 = vld [vmem:[#allocation5 + $0x290] sm:$0xff]  ;;  %v596_v28 = vld [vmem:[#allocation5 + $0x378] sm:$0xff] }
  0xcd   : > { %2394 = vmatpush1.bf16.msra.mxu0 %v2393_v39  ;;  %v541_v39 = vld [vmem:[#allocation5 + $0x1c0] sm:$0xff] }
  0xce   : > { %2419 = vmatpush3.bf16.msra.mxu1 %v2418_v40  ;;  %2396 = vmatprep.subr.bf16.mxu0 %v2395_v41  ;;  %v548_v40 = vld [vmem:[#allocation5 + $0x1f8] sm:$0xff]  ;;  %v543_v41 = vld [vmem:[#allocation5 + $0x1d0] sm:$0xff] }
  0xcf   : > { %2420 = vmatprep.subr.bf16.mxu1 %v3036_v53  ;;  %v2441_v49 = vpack.c.bf16 %v548_v40, %v541_v39  ;;  %v2473_v50 = vpack.c.bf16 %v550_v43, %v543_v41  ;;  %v2493_v39 = vpack.c.bf16 %v510_v34, %v503_v33  ;;  %v524_v43 = vld [vmem:[#allocation5 + $0x138] sm:$0xff]  ;;  %v1285_v33 = vld [vmem:[#allocation10 + $0x50] sm:$0xff] }
  0xd1   : > { %2398 = vmatpush1.bf16.msra.mxu0 %v2397_v51  ;;  %v2443_v51 = vpack.c.bf16 %v563_v45, %v556_v44  ;;  %v519_v44 = vld [vmem:[#allocation5 + $0x110] sm:$0xff]  ;;  %v526_v45 = vld [vmem:[#allocation5 + $0x148] sm:$0xff] }
  0xd2   : > { %2422 = vmatpush3.bf16.msra.mxu1 %v2421_v52  ;;  %2424 = vmatprep.subr.bf16.mxu0 %v2423_v54  ;;  %v555_v52 = vld [vmem:[#allocation5 + $0x230] sm:$0xff]  ;;  %v562_v54 = vld [vmem:[#allocation5 + $0x268] sm:$0xff] }
  0xd3   : > { %2456 = vmatprep.subr.bf16.mxu1 %v2455_v58  ;;  %v570_v58 = vld [vmem:[#allocation5 + $0x2a8] sm:$0xff]  ;;  %v2445_v62 = vpack.c.bf16 %v562_v54, %v555_v52  ;;  %v531_v52 = vld [vmem:[#allocation5 + $0x170] sm:$0xff] }
  0xd4   : > { %916 = vmatmul.mubr.f32.vlgmr.msra.gmra.mrb[2].mxu0 %v3313_v46  ;;  %v538_v54 = vld [vmem:[#allocation5 + $0x1a8] sm:$0xff] }
  0xd5   : > { %2426 = vmatpush1.bf16.msra.mxu0 %v2425_v0  ;;  %2196 = vmatmul.mubr.f32.vlgmr.msra.gmra.mrb[2].mxu1 %v3313_v46  ;;  %v2433_v46 = vpack.c.bf16 %v520_v17, %v513_v16  ;;  %v2447_v0 = vpack.c.bf16 %v577_v59, %v570_v58  ;;  %v585_v16 = vld [vmem:[#allocation5 + $0x320] sm:$0xff]  ;;  %v2483_v17 = vpack.c.bf16 %v593_v9, %v586_v8  ;;  %v566_v8 = vld [vmem:[#allocation5 + $0x288] sm:$0xff] }
  0xd6   : > { %2458 = vmatpush1.bf16.msra.mxu1 %v2457_v1  ;;  %2428 = vmatprep.subr.bf16.mxu0 %v2427_v2  ;;  %v569_v1 = vld [vmem:[#allocation5 + $0x2a0] sm:$0xff]  ;;  %v576_v2 = vld [vmem:[#allocation5 + $0x2d8] sm:$0xff]  ;;  %v2485_v22 = vpack.c.bf16 %v592_v18, %v585_v16  ;;  %v2501_v59 = vpack.c.bf16 %v538_v54, %v531_v52 }
  0xd7   : > { %2460 = vmatprep.subr.bf16.mxu1 %v2459_v6  ;;  %1056 = vmatprep.mubr.f32.mxu0 %v3035_v10  ;;  %v584_v6 = vld [vmem:[#allocation5 + $0x318] sm:$0xff]  ;;  %v2449_v11 = vpack.c.bf16 %v576_v2, %v569_v1  ;;  %v553_v58 = vld [vmem:[#allocation5 + $0x220] sm:$0xff]  ;;  %v554_v1 = vld [vmem:[#allocation5 + $0x228] sm:$0xff] }
  0xd8   : > { %1127 = vmatprep.mubr.f32.mxu1 %v3035_v10  ;;  %v2503_v61 = vpack.c.bf16 %v553_v58, %v546_v57  ;;  %v560_v2 = vld [vmem:[#allocation5 + $0x258] sm:$0xff]  ;;  %v561_v9 = vld [vmem:[#allocation5 + $0x260] sm:$0xff] }
  0xd9   : > { %2430 = vmatpush1.bf16.msra.mxu0 %v2429_v13  ;;  %v2451_v13 = vpack.c.bf16 %v591_v7, %v584_v6  ;;  %v2507_v6 = vpack.c.bf16 %v567_v3, %v560_v2  ;;  %v559_v7 = vld [vmem:[#allocation5 + $0x250] sm:$0xff]  ;;  %v580_v18 = vld [vmem:[#allocation5 + $0x2f8] sm:$0xff]  ;;  %v1291_v52 = vld [vmem:[#allocation10 + $0x80] sm:$0xff] }
  0xda   : > { %2462 = vmatpush1.bf16.msra.mxu1 %v2461_v14  ;;  %2432 = vmatprep.subr.bf16.mxu0 %v2431_v15  ;;  %v583_v14 = vld [vmem:[#allocation5 + $0x310] sm:$0xff]  ;;  %v590_v15 = vld [vmem:[#allocation5 + $0x348] sm:$0xff]  ;;  %v1311_v57 = vld [vmem:[#allocation10 + $0x120] sm:$0xff] }
  0xdb   : > { %2464 = vmatprep.subr.bf16.mxu1 %v2463_v19  ;;  %v490_v19 = vld [vmem:[#allocation5 + $0x28] sm:$0xff]  ;;  %v2453_v21 = vpack.c.bf16 %v590_v15, %v583_v14  ;;  %v2509_v14 = vpack.c.bf16 %v566_v8, %v559_v7  ;;  %v1306_v58 = vld [vmem:[#allocation10 + $0xf8] sm:$0xff]  ;;  %v1327_v7 = vld [vmem:[#allocation10 + $0x1a0] sm:$0xff] }
  0xdc   : > { %v2487_v23 = vpack.c.bf16 %v497_v20, %v490_v19  ;;  %v575_v19 = vld [vmem:[#allocation5 + $0x2d0] sm:$0xff]  ;;  %v582_v20 = vld [vmem:[#allocation5 + $0x308] sm:$0xff] }
  0xdd   : > { %2434 = vmatpush1.bf16.msra.mxu0 %v2433_v46  ;;  %v496_v46 = vld [vmem:[#allocation5 + $0x58] sm:$0xff]  ;;  %v1312_v3 = vld [vmem:[#allocation10 + $0x128] sm:$0xff] }
  0xde   : > { %2466 = vmatpush1.bf16.msra.mxu1 %v2465_v25  ;;  %2436 = vmatprep.subr.bf16.mxu0 %v2435_v26  ;;  %v491_v25 = vld [vmem:[#allocation5 + $0x30] sm:$0xff]  ;;  %v498_v26 = vld [vmem:[#allocation5 + $0x68] sm:$0xff] }
  0xdf   : > { %2468 = vmatprep.subr.bf16.mxu1 %v2467_v30  ;;  %v2489_v30 = vpack.c.bf16 %v496_v46, %v489_v24  ;;  %v2520_v31 = vpack.c.bf16 %v498_v26, %v491_v25  ;;  %v2538_v24 = vpack.c.bf16 %v582_v20, %v575_v19  ;;  %v587_v25 = vld [vmem:[#allocation5 + $0x330] sm:$0xff]  ;;  %v594_v26 = vld [vmem:[#allocation5 + $0x368] sm:$0xff] }
  0xe0   : > { %v2517_v34 = vpack.c.bf16 %v594_v26, %v587_v25  ;;  %v1341_v19 = vld [vmem:[#allocation10 + $0x210] sm:$0xff]  ;;  %v1340_v26 = vld [vmem:[#allocation10 + $0x208] sm:$0xff] }
  0xe1   : > { %2438 = vmatpush1.bf16.msra.mxu0 %v2437_v36  ;;  %v512_v36 = vld [vmem:[#allocation5 + $0xd8] sm:$0xff] }
  0xe2   : > { %2470 = vmatpush1.bf16.msra.mxu1 %v2469_v37  ;;  %2440 = vmatprep.subr.bf16.mxu0 %v2439_v38  ;;  %v518_v37 = vld [vmem:[#allocation5 + $0x108] sm:$0xff]  ;;  %v525_v38 = vld [vmem:[#allocation5 + $0x140] sm:$0xff]  ;;  %v2523_v40 = vpack.c.bf16 %v512_v36, %v505_v35  ;;  %v2541_v35 = vpack.c.bf16 %v596_v28, %v589_v27  ;;  %v1346_v27 = vld [vmem:[#allocation10 + $0x238] sm:$0xff] }
  0xe3   : > { %2472 = vmatprep.subr.bf16.mxu1 %v2471_v42  ;;  %v2495_v41 = vpack.c.bf16 %v525_v38, %v518_v37  ;;  %v517_v42 = vld [vmem:[#allocation5 + $0x100] sm:$0xff]  ;;  %v1282_v38 = vld [vmem:[#allocation10 + $0x38] sm:$0xff]  ;;  %v1353_v28 = vld [vmem:[#allocation10 + $0x270] sm:$0xff] }
  0xe4   : > { %v1275_v37 = vld [vmem:[#allocation10] sm:$0xff] }
  0xe5   : > { %2442 = vmatpush1.bf16.msra.mxu0 %v2441_v49  ;;  %v2497_v49 = vpack.c.bf16 %v524_v43, %v517_v42  ;;  %v1290_v42 = vld [vmem:[#allocation10 + $0x78] sm:$0xff]  ;;  %v1297_v43 = vld [vmem:[#allocation10 + $0xb0] sm:$0xff] }
  0xe6   : > { %2474 = vmatpush1.bf16.msra.mxu1 %v2473_v50  ;;  %2444 = vmatprep.subr.bf16.mxu0 %v2443_v51  ;;  %v2526_v50 = vpack.c.bf16 %v526_v45, %v519_v44  ;;  %v2499_v51 = vpack.c.bf16 %v539_v48, %v532_v47  ;;  %v1292_v44 = vld [vmem:[#allocation10 + $0x88] sm:$0xff]  ;;  %v1299_v45 = vld [vmem:[#allocation10 + $0xc0] sm:$0xff]  ;;  %v2545_v47 = vpack.c.bf16 %v1282_v38, %v1275_v37 }
  0xe7   : > { %2476 = vmatprep.subr.bf16.mxu1 %v2475_v56  ;;  %v540_v56 = vld [vmem:[#allocation5 + $0x1b8] sm:$0xff]  ;;  %v2579_v54 = vpack.c.bf16 %v1299_v45, %v1292_v44  ;;  %v1347_v37 = vld [vmem:[#allocation10 + $0x240] sm:$0xff] }
  0xe8   : > { %v2529_v60 = vpack.c.bf16 %v540_v56, %v533_v55  ;;  %v1298_v55 = vld [vmem:[#allocation10 + $0xb8] sm:$0xff]  ;;  %v1304_v56 = vld [vmem:[#allocation10 + $0xe8] sm:$0xff] }
  0xe9   : > { %2446 = vmatpush1.bf16.msra.mxu0 %v2445_v62  ;;  %v545_v62 = vld [vmem:[#allocation5 + $0x1e0] sm:$0xff] }
  0xea   : > { %2478 = vmatpush1.bf16.msra.mxu1 %v2477_v63  ;;  %2448 = vmatprep.subr.bf16.mxu0 %v2447_v0  ;;  %v552_v63 = vld [vmem:[#allocation5 + $0x218] sm:$0xff]  ;;  %v547_v0 = vld [vmem:[#allocation5 + $0x1f0] sm:$0xff] }
  0xeb   : > { %2480 = vmatprep.subr.bf16.mxu1 %v2479_v4  ;;  %v2505_v4 = vpack.c.bf16 %v552_v63, %v545_v62  ;;  %v2532_v5 = vpack.c.bf16 %v554_v1, %v547_v0  ;;  %v2551_v62 = vpack.c.bf16 %v1311_v57, %v1304_v56  ;;  %v1303_v63 = vld [vmem:[#allocation10 + $0xe0] sm:$0xff]  ;;  %v1310_v0 = vld [vmem:[#allocation10 + $0x118] sm:$0xff]  ;;  %v1305_v1 = vld [vmem:[#allocation10 + $0xf0] sm:$0xff] }
  0xec   : > { %v2585_v8 = vpack.c.bf16 %v1312_v3, %v1305_v1  ;;  %v1376_v56 = vld [vmem:[#allocation10 + $0x328] sm:$0xff]  ;;  %v1383_v57 = vld [vmem:[#allocation10 + $0x360] sm:$0xff]  ;;  %v1382_v1 = vld [vmem:[#allocation10 + $0x358] sm:$0xff] }
  0xed   : > { %2450 = vmatpush1.bf16.msra.mxu0 %v2449_v11  ;;  %v568_v11 = vld [vmem:[#allocation5 + $0x298] sm:$0xff]  ;;  %v1287_v3 = vld [vmem:[#allocation10 + $0x60] sm:$0xff] }
  0xee   : > { %2482 = vmatpush1.bf16.msra.mxu1 %v2481_v12  ;;  %2452 = vmatprep.subr.bf16.mxu0 %v2451_v13  ;;  %v574_v12 = vld [vmem:[#allocation5 + $0x2c8] sm:$0xff]  ;;  %v581_v13 = vld [vmem:[#allocation5 + $0x300] sm:$0xff]  ;;  %v2535_v15 = vpack.c.bf16 %v568_v11, %v561_v9  ;;  %v1317_v11 = vld [vmem:[#allocation10 + $0x150] sm:$0xff] }
  0xef   : > { %2484 = vmatprep.subr.bf16.mxu1 %v2483_v17  ;;  %v2511_v16 = vpack.c.bf16 %v581_v13, %v574_v12  ;;  %v573_v17 = vld [vmem:[#allocation5 + $0x2c0] sm:$0xff]  ;;  %v1324_v12 = vld [vmem:[#allocation10 + $0x188] sm:$0xff] }
  0xf0   : > { %v1319_v13 = vld [vmem:[#allocation10 + $0x160] sm:$0xff]  ;;  %v2557_v20 = vpack.c.bf16 %v1324_v12, %v1317_v11  ;;  %v1281_v11 = vld [vmem:[#allocation10 + $0x30] sm:$0xff]  ;;  %v1288_v12 = vld [vmem:[#allocation10 + $0x68] sm:$0xff] }
  0xf1   : > { %2454 = vmatpush1.bf16.msra.mxu0 %v2453_v21  ;;  %v588_v21 = vld [vmem:[#allocation5 + $0x338] sm:$0xff] }
  0xf2   : > { %2486 = vmatpush1.bf16.msra.mxu1 %v2485_v22  ;;  %2488 = vmatprep.subr.bf16.mxu0 %v2487_v23  ;;  %v595_v22 = vld [vmem:[#allocation5 + $0x370] sm:$0xff]  ;;  %v2513_v23 = vpack.c.bf16 %v580_v18, %v573_v17  ;;  %v1339_v17 = vld [vmem:[#allocation10 + $0x200] sm:$0xff]  ;;  %v1334_v18 = vld [vmem:[#allocation10 + $0x1d8] sm:$0xff] }
  0xf3   : > { %2519 = vmatprep.subr.bf16.mxu1 %v3036_v53  ;;  %v2515_v46 = vpack.c.bf16 %v595_v22, %v588_v21  ;;  %v2591_v25 = vpack.c.bf16 %v1341_v19, %v1334_v18  ;;  %v1300_v18 = vld [vmem:[#allocation10 + $0xc8] sm:$0xff] }
  0xf4   : > { %1057 = vmatmul.mubr.f32.vlgmr.msra.gmra.mrb[0].mxu0 %v3332_v29  ;;  %v1308_v19 = vld [vmem:[#allocation10 + $0x108] sm:$0xff] }
  0xf5   : > { %2490 = vmatpush1.bf16.msra.mxu0 %v2489_v30  ;;  %1128 = vmatmul.mubr.f32.vlgmr.msra.gmra.mrb[0].mxu1 %v3332_v29  ;;  %v1276_v30 = vld [vmem:[#allocation10 + $0x8] sm:$0xff] }
  0xf6   : > { %2521 = vmatpush3.bf16.msra.mxu1 %v2520_v31  ;;  %2492 = vmatprep.subr.bf16.mxu0 %v2491_v32  ;;  %v1283_v31 = vld [vmem:[#allocation10 + $0x40] sm:$0xff]  ;;  %v1278_v32 = vld [vmem:[#allocation10 + $0x18] sm:$0xff] }
  0xf7   : > { %2522 = vmatprep.subr.bf16.mxu1 %v3036_v53  ;;  %1198 = vmatprep.mubr.f32.mxu0 %v3035_v10  ;;  %v2543_v36 = vpack.c.bf16 %v1283_v31, %v1276_v30  ;;  %v1348_v30 = vld [vmem:[#allocation10 + $0x248] sm:$0xff]  ;;  %v1355_v31 = vld [vmem:[#allocation10 + $0x280] sm:$0xff] }
  0xf8   : > { %2230 = vmatprep.mubr.msk.f32.mxu1 %vm3037_vm0, %v3035_v10  ;;  %v2595_v38 = vpack.c.bf16 %v1355_v31, %v1348_v30  ;;  %v1309_v30 = vld [vmem:[#allocation10 + $0x110] sm:$0xff]  ;;  %v1316_v31 = vld [vmem:[#allocation10 + $0x148] sm:$0xff] }
  0xf9   : > { %2494 = vmatpush1.bf16.msra.mxu0 %v2493_v39  ;;  %v1277_v39 = vld [vmem:[#allocation10 + $0x10] sm:$0xff] }
  0xfa   : > { %2524 = vmatpush3.bf16.msra.mxu1 %v2523_v40  ;;  %2496 = vmatprep.subr.bf16.mxu0 %v2495_v41  ;;  %v2575_v40 = vpack.c.bf16 %v1285_v33, %v1278_v32  ;;  %v1284_v41 = vld [vmem:[#allocation10 + $0x48] sm:$0xff] }
  0xfb   : > { %2525 = vmatprep.subr.bf16.mxu1 %v3036_v53  ;;  %v2577_v48 = vpack.c.bf16 %v1284_v41, %v1277_v39  ;;  %v1354_v39 = vld [vmem:[#allocation10 + $0x278] sm:$0xff]  ;;  %v1367_v41 = vld [vmem:[#allocation10 + $0x2e0] sm:$0xff] }
  0xfc   : > { %v2597_v45 = vpack.c.bf16 %v1354_v39, %v1347_v37  ;;  %v1336_v37 = vld [vmem:[#allocation10 + $0x1e8] sm:$0xff]  ;;  %v1323_v39 = vld [vmem:[#allocation10 + $0x180] sm:$0xff] }
  0xfd   : > { %2498 = vmatpush1.bf16.msra.mxu0 %v2497_v49  ;;  %v2547_v49 = vpack.c.bf16 %v1297_v43, %v1290_v42  ;;  %v1362_v42 = vld [vmem:[#allocation10 + $0x2b8] sm:$0xff]  ;;  %v1369_v43 = vld [vmem:[#allocation10 + $0x2f0] sm:$0xff] }
  0xfe   : > { %2527 = vmatpush3.bf16.msra.mxu1 %v2526_v50  ;;  %2500 = vmatprep.subr.bf16.mxu0 %v2499_v51  ;;  %v1289_v50 = vld [vmem:[#allocation10 + $0x70] sm:$0xff]  ;;  %v1296_v51 = vld [vmem:[#allocation10 + $0xa8] sm:$0xff] }
  0xff   : > { %2528 = vmatprep.subr.bf16.mxu1 %v3036_v53 }
 0x101   : > { %2502 = vmatpush1.bf16.msra.mxu0 %v2501_v59  ;;  %v1313_v59 = vld [vmem:[#allocation10 + $0x130] sm:$0xff] }
 0x102   : > { %2530 = vmatpush3.bf16.msra.mxu1 %v2529_v60  ;;  %2504 = vmatprep.subr.bf16.mxu0 %v2503_v61  ;;  %v2549_v60 = vpack.c.bf16 %v1296_v51, %v1289_v50  ;;  %v2581_v61 = vpack.c.bf16 %v1298_v55, %v1291_v52  ;;  %v2583_v2 = vpack.c.bf16 %v1313_v59, %v1306_v58  ;;  %v1361_v50 = vld [vmem:[#allocation10 + $0x2b0] sm:$0xff]  ;;  %v1368_v52 = vld [vmem:[#allocation10 + $0x2e8] sm:$0xff] }
 0x103   : > { %2531 = vmatprep.subr.bf16.mxu1 %v3036_v53  ;;  %v2599_v51 = vpack.c.bf16 %v1369_v43, %v1362_v42  ;;  %v1381_v55 = vld [vmem:[#allocation10 + $0x350] sm:$0xff]  ;;  %v2601_v59 = vpack.c.bf16 %v1368_v52, %v1361_v50  ;;  %v1344_v50 = vld [vmem:[#allocation10 + $0x228] sm:$0xff] }
 0x105   : > { %2506 = vmatpush1.bf16.msra.mxu0 %v2505_v4  ;;  %v1318_v4 = vld [vmem:[#allocation10 + $0x158] sm:$0xff] }
 0x106   : > { %2533 = vmatpush3.bf16.msra.mxu1 %v2532_v5  ;;  %2508 = vmatprep.subr.bf16.mxu0 %v2507_v6  ;;  %v1325_v5 = vld [vmem:[#allocation10 + $0x190] sm:$0xff]  ;;  %v1320_v6 = vld [vmem:[#allocation10 + $0x168] sm:$0xff] }
 0x107   : > { %2534 = vmatprep.subr.bf16.mxu1 %v3036_v53  ;;  %v2555_v9 = vpack.c.bf16 %v1325_v5, %v1318_v4 }
 0x109   : > { %2510 = vmatpush1.bf16.msra.mxu0 %v2509_v14  ;;  %v2587_v14 = vpack.c.bf16 %v1327_v7, %v1320_v6  ;;  %v1279_v7 = vld [vmem:[#allocation10 + $0x20] sm:$0xff] }
 0x10a   : > { %2536 = vmatpush3.bf16.msra.mxu1 %v2535_v15  ;;  %2512 = vmatprep.subr.bf16.mxu0 %v2511_v16  ;;  %v1326_v15 = vld [vmem:[#allocation10 + $0x198] sm:$0xff]  ;;  %v1332_v16 = vld [vmem:[#allocation10 + $0x1c8] sm:$0xff] }
 0x10b   : > { %2537 = vmatprep.subr.bf16.mxu1 %v3036_v53  ;;  %v2589_v21 = vpack.c.bf16 %v1326_v15, %v1319_v13  ;;  %v2559_v22 = vpack.c.bf16 %v1339_v17, %v1332_v16  ;;  %v3351_v13 = vld [vmem:[#allocation4] sm:$0xff]  ;;  %v2640_v16 = vpack.c.bf16 %v1288_v12, %v1281_v11  ;;  %v1293_v17 = vld [vmem:[#allocation10 + $0x90] sm:$0xff]  ;;  %v1379_v11 = vld [vmem:[#allocation10 + $0x340] sm:$0xff] }
 0x10c   : > { %v1386_v12 = vld [vmem:[#allocation10 + $0x378] sm:$0xff] }
 0x10d   : > { %2514 = vmatpush1.bf16.msra.mxu0 %v2513_v23  ;;  %v1331_v23 = vld [vmem:[#allocation10 + $0x1c0] sm:$0xff] }
 0x10e   : > { %2539 = vmatpush3.bf16.msra.mxu1 %v2538_v24  ;;  %2516 = vmatprep.subr.bf16.mxu0 %v2515_v46  ;;  %v1338_v24 = vld [vmem:[#allocation10 + $0x1f8] sm:$0xff]  ;;  %v1333_v46 = vld [vmem:[#allocation10 + $0x1d0] sm:$0xff] }
 0x10f   : > { %2540 = vmatprep.subr.bf16.mxu1 %v3036_v53  ;;  %v2561_v32 = vpack.c.bf16 %v1338_v24, %v1331_v23  ;;  %v2593_v33 = vpack.c.bf16 %v1340_v26, %v1333_v46  ;;  %v2613_v23 = vpack.c.bf16 %v1300_v18, %v1293_v17  ;;  %v1314_v26 = vld [vmem:[#allocation10 + $0x138] sm:$0xff]  ;;  %v1761_v17 = vld [vmem:[#allocation11 + $0x8] sm:$0xff] }
 0x111   : > { %2518 = vmatpush1.bf16.msra.mxu0 %v2517_v34  ;;  %v2563_v34 = vpack.c.bf16 %v1353_v28, %v1346_v27  ;;  %v1322_v27 = vld [vmem:[#allocation10 + $0x178] sm:$0xff]  ;;  %v1329_v28 = vld [vmem:[#allocation10 + $0x1b0] sm:$0xff] }
 0x112   : > { %2542 = vmatpush3.bf16.msra.mxu1 %v2541_v35  ;;  %2544 = vmatprep.subr.bf16.mxu0 %v2543_v36  ;;  %v1345_v35 = vld [vmem:[#allocation10 + $0x230] sm:$0xff]  ;;  %v1352_v36 = vld [vmem:[#allocation10 + $0x268] sm:$0xff] }
 0x113   : > { %2576 = vmatprep.subr.bf16.mxu1 %v2575_v40  ;;  %v1360_v40 = vld [vmem:[#allocation10 + $0x2a8] sm:$0xff]  ;;  %v2565_v44 = vpack.c.bf16 %v1352_v36, %v1345_v35  ;;  %v1321_v35 = vld [vmem:[#allocation10 + $0x170] sm:$0xff] }
 0x114   : > { %1199 = vmatmul.mubr.f32.vlgmr.msra.gmra.mrb[2].mxu0 %v3332_v29  ;;  %v1328_v36 = vld [vmem:[#allocation10 + $0x1a8] sm:$0xff] }
 0x115   : > { %2546 = vmatpush1.bf16.msra.mxu0 %v2545_v47  ;;  %2231 = vmatmul.mubr.f32.vlgmr.msra.gmra.mrb[4].mxu1 %v3332_v29  ;;  %v2553_v29 = vpack.c.bf16 %v1310_v0, %v1303_v63  ;;  %v2567_v47 = vpack.c.bf16 %v1367_v41, %v1360_v40  ;;  %v1375_v63 = vld [vmem:[#allocation10 + $0x320] sm:$0xff]  ;;  %v2603_v0 = vpack.c.bf16 %v1383_v57, %v1376_v56  ;;  %v1330_v40 = vld [vmem:[#allocation10 + $0x1b8] sm:$0xff]  ;;  %v1356_v56 = vld [vmem:[#allocation10 + $0x288] sm:$0xff] }
 0x116   : > { %2578 = vmatpush1.bf16.msra.mxu1 %v2577_v48  ;;  %2548 = vmatprep.subr.bf16.mxu0 %v2547_v49  ;;  %v1359_v48 = vld [vmem:[#allocation10 + $0x2a0] sm:$0xff]  ;;  %v1366_v49 = vld [vmem:[#allocation10 + $0x2d8] sm:$0xff]  ;;  %v2605_v5 = vpack.c.bf16 %v1382_v1, %v1375_v63  ;;  %v2621_v41 = vpack.c.bf16 %v1328_v36, %v1321_v35  ;;  %v2649_v43 = vpack.c.bf16 %v1330_v40, %v1323_v39  ;;  %v1364_v57 = vld [vmem:[#allocation10 + $0x2c8] sm:$0xff] }
 0x117   : > { %2580 = vmatprep.subr.bf16.mxu1 %v2579_v54  ;;  %1451 = vmatprep.mubr.f32.mxu0 %v3035_v10  ;;  %v1374_v54 = vld [vmem:[#allocation10 + $0x318] sm:$0xff]  ;;  %v2569_v58 = vpack.c.bf16 %v1366_v49, %v1359_v48  ;;  %v1357_v48 = vld [vmem:[#allocation10 + $0x290] sm:$0xff]  ;;  %v1773_v35 = vld [vmem:[#allocation11 + $0x68] sm:$0xff] }
 0x118   : > { %1522 = vmatprep.mubr.f32.mxu1 %v3035_v10  ;;  %v1337_v49 = vld [vmem:[#allocation10 + $0x1f0] sm:$0xff]  ;;  %v1370_v1 = vld [vmem:[#allocation10 + $0x2f8] sm:$0xff] }
 0x119   : > { %2550 = vmatpush1.bf16.msra.mxu0 %v2549_v60  ;;  %v2571_v60 = vpack.c.bf16 %v1381_v55, %v1374_v54  ;;  %v2652_v54 = vpack.c.bf16 %v1344_v50, %v1337_v49  ;;  %v1349_v55 = vld [vmem:[#allocation10 + $0x250] sm:$0xff]  ;;  %v1677_v49 = vld [vmem:[%s3478_s6] sm:$0xff] }
 0x11a   : > { %2582 = vmatpush1.bf16.msra.mxu1 %v2581_v61  ;;  %2552 = vmatprep.subr.bf16.mxu0 %v2551_v62  ;;  %v1373_v61 = vld [vmem:[#allocation10 + $0x310] sm:$0xff]  ;;  %v1380_v62 = vld [vmem:[#allocation10 + $0x348] sm:$0xff] }
 0x11b   : > { %2584 = vmatprep.subr.bf16.mxu1 %v2583_v2  ;;  %v1280_v2 = vld [vmem:[#allocation10 + $0x28] sm:$0xff]  ;;  %v2573_v4 = vpack.c.bf16 %v1380_v62, %v1373_v61  ;;  %v2629_v61 = vpack.c.bf16 %v1356_v56, %v1349_v55 }
 0x11c   : > { %v2607_v6 = vpack.c.bf16 %v1287_v3, %v1280_v2  ;;  %v1378_v2 = vld [vmem:[#allocation10 + $0x338] sm:$0xff]  ;;  %v1385_v3 = vld [vmem:[#allocation10 + $0x370] sm:$0xff] }
 0x11d   : > { %2554 = vmatpush1.bf16.msra.mxu0 %v2553_v29  ;;  %v1286_v29 = vld [vmem:[#allocation10 + $0x58] sm:$0xff] }
 0x11e   : > { %2586 = vmatpush1.bf16.msra.mxu1 %v2585_v8  ;;  %2556 = vmatprep.subr.bf16.mxu0 %v2555_v9  ;;  %v1294_v8 = vld [vmem:[#allocation10 + $0x98] sm:$0xff]  ;;  %v1301_v9 = vld [vmem:[#allocation10 + $0xd0] sm:$0xff] }
 0x11f   : > { %2588 = vmatprep.subr.bf16.mxu1 %v2587_v14  ;;  %v2609_v14 = vpack.c.bf16 %v1286_v29, %v1279_v7  ;;  %v2611_v15 = vpack.c.bf16 %v1301_v9, %v1294_v8  ;;  %v2635_v7 = vpack.c.bf16 %v1385_v3, %v1378_v2  ;;  %v1377_v8 = vld [vmem:[#allocation10 + $0x330] sm:$0xff]  ;;  %v1384_v9 = vld [vmem:[#allocation10 + $0x368] sm:$0xff] }
 0x121   : > { %2558 = vmatpush1.bf16.msra.mxu0 %v2557_v20  ;;  %v1315_v20 = vld [vmem:[#allocation10 + $0x140] sm:$0xff] }
 0x122   : > { %2590 = vmatpush1.bf16.msra.mxu1 %v2589_v21  ;;  %2560 = vmatprep.subr.bf16.mxu0 %v2559_v22  ;;  %v1295_v21 = vld [vmem:[#allocation10 + $0xa0] sm:$0xff]  ;;  %v1302_v22 = vld [vmem:[#allocation10 + $0xd8] sm:$0xff]  ;;  %v2615_v24 = vpack.c.bf16 %v1315_v20, %v1308_v19  ;;  %v1762_v19 = vld [vmem:[#allocation11 + $0x10] sm:$0xff] }
 0x123   : > { %2592 = vmatprep.subr.bf16.mxu1 %v2591_v25  ;;  %v2643_v46 = vpack.c.bf16 %v1302_v22, %v1295_v21  ;;  %v1307_v25 = vld [vmem:[#allocation10 + $0x100] sm:$0xff]  ;;  %v1763_v20 = vld [vmem:[#allocation11 + $0x18] sm:$0xff] }
 0x124   : > { %v2667_v21 = vpack.c.bf16 %v1763_v20, %v1762_v19  ;;  %v1764_v22 = vld [vmem:[#allocation11 + $0x20] sm:$0xff] }
 0x125   : > { %2562 = vmatpush1.bf16.msra.mxu0 %v2561_v32  ;;  %v2617_v32 = vpack.c.bf16 %v1314_v26, %v1307_v25  ;;  %v1767_v25 = vld [vmem:[#allocation11 + $0x38] sm:$0xff] }
 0x126   : > { %2594 = vmatpush1.bf16.msra.mxu1 %v2593_v33  ;;  %2564 = vmatprep.subr.bf16.mxu0 %v2563_v34  ;;  %v2619_v33 = vpack.c.bf16 %v1329_v28, %v1322_v27  ;;  %v2646_v34 = vpack.c.bf16 %v1316_v31, %v1309_v30  ;;  %v1768_v27 = vld [vmem:[#allocation11 + $0x40] sm:$0xff]  ;;  %v1769_v28 = vld [vmem:[#allocation11 + $0x48] sm:$0xff]  ;;  %v1770_v31 = vld [vmem:[#allocation11 + $0x50] sm:$0xff] }
 0x127   : > { %2596 = vmatprep.subr.bf16.mxu1 %v2595_v38  ;;  %v1343_v38 = vld [vmem:[#allocation10 + $0x220] sm:$0xff]  ;;  %v2676_v30 = vpack.c.bf16 %v1769_v28, %v1768_v27 }
 0x128   : > { %v2623_v42 = vpack.c.bf16 %v1343_v38, %v1336_v37  ;;  %v1774_v37 = vld [vmem:[#allocation11 + $0x70] sm:$0xff]  ;;  %v1775_v38 = vld [vmem:[#allocation11 + $0x78] sm:$0xff] }
 0x129   : > { %2566 = vmatpush1.bf16.msra.mxu0 %v2565_v44  ;;  %v1335_v44 = vld [vmem:[#allocation10 + $0x1e0] sm:$0xff]  ;;  %v2685_v39 = vpack.c.bf16 %v1775_v38, %v1774_v37 }
 0x12a   : > { %2598 = vmatpush1.bf16.msra.mxu1 %v2597_v45  ;;  %2568 = vmatprep.subr.bf16.mxu0 %v2567_v47  ;;  %v1342_v45 = vld [vmem:[#allocation10 + $0x218] sm:$0xff] }
 0x12b   : > { %2600 = vmatprep.subr.bf16.mxu1 %v2599_v51  ;;  %v1350_v47 = vld [vmem:[#allocation10 + $0x258] sm:$0xff]  ;;  %v2625_v51 = vpack.c.bf16 %v1342_v45, %v1335_v44  ;;  %v1679_v45 = vlaneseq }
 0x12c   : > { %v2627_v52 = vpack.c.bf16 %v1357_v48, %v1350_v47 }
 0x12d   : > { %2570 = vmatpush1.bf16.msra.mxu0 %v2569_v58  ;;  %v1371_v58 = vld [vmem:[#allocation10 + $0x300] sm:$0xff]  ;;  %v1680_v47 = vshrl.u32 %v1679_v45, 7 }
 0x12e   : > { %2602 = vmatpush1.bf16.msra.mxu1 %v2601_v59  ;;  %2572 = vmatprep.subr.bf16.mxu0 %v2571_v60  ;;  %v1351_v59 = vld [vmem:[#allocation10 + $0x260] sm:$0xff]  ;;  %v1358_v60 = vld [vmem:[#allocation10 + $0x298] sm:$0xff]  ;;  %v2631_v62 = vpack.c.bf16 %v1371_v58, %v1364_v57 }
 0x12f   : > { %2604 = vmatprep.subr.bf16.mxu1 %v2603_v0  ;;  %v2655_v63 = vpack.c.bf16 %v1358_v60, %v1351_v59  ;;  %v1363_v0 = vld [vmem:[#allocation10 + $0x2c0] sm:$0xff]  ;;  %v1681_v48 = vsub.s32 0, %v1680_v47  ;;  %v1685_v50 = vsub.s32 1, %v1680_v47  ;;  %v1701_v19 = vsub.s32 5, %v1680_v47 }
 0x131   : > { %2574 = vmatpush1.bf16.msra.mxu0 %v2573_v4  ;;  %v1365_v4 = vld [vmem:[#allocation10 + $0x2d0] sm:$0xff] }
 0x132   : > { %2606 = vmatpush1.bf16.msra.mxu1 %v2605_v5  ;;  %2608 = vmatprep.subr.bf16.mxu0 %v2607_v6  ;;  %v1372_v5 = vld [vmem:[#allocation10 + $0x308] sm:$0xff]  ;;  %v2633_v6 = vpack.c.bf16 %v1370_v1, %v1363_v0 }
 0x133   : > { %2639 = vmatprep.subr.bf16.mxu1 %v3036_v53  ;;  %v2658_v29 = vpack.c.bf16 %v1372_v5, %v1365_v4 }
 0x134   : > { %1452 = vmatmul.mubr.f32.vlgmr.msra.gmra.mrb[0].mxu0 %v3351_v13 }
 0x135   : > { %1523 = vmatmul.mubr.f32.vlgmr.msra.gmra.mrb[0].mxu1 %v3351_v13  ;;  %2610 = vmatpush1.bf16.msra.mxu0 %v2609_v14  ;;  %v2637_v14 = vpack.c.bf16 %v1384_v9, %v1377_v8 }
 0x136   : > { %2612 = vmatprep.subr.bf16.mxu0 %v2611_v15  ;;  %2641 = vmatpush3.bf16.msra.mxu1 %v2640_v16  ;;  %v2661_v15 = vpack.c.bf16 %v1386_v12, %v1379_v11  ;;  %v1760_v16 = vld [vmem:[#allocation11] sm:$0xff] }
 0x137   : > { %2642 = vmatprep.subr.bf16.mxu1 %v3036_v53  ;;  %1593 = vmatprep.mubr.f32.mxu0 %v3035_v10  ;;  %v2664_v18 = vpack.c.bf16 %v1761_v17, %v1760_v16 }
 0x138   : > { %2265 = vmatprep.mubr.msk.f32.mxu1 %vm3037_vm0, %v3035_v10 }
 0x139   : > { %2614 = vmatpush1.bf16.msra.mxu0 %v2613_v23  ;;  %v1765_v23 = vld [vmem:[#allocation11 + $0x28] sm:$0xff] }
 0x13a   : > { %2616 = vmatprep.subr.bf16.mxu0 %v2615_v24  ;;  %2644 = vmatpush3.bf16.msra.mxu1 %v2643_v46  ;;  %v2670_v24 = vpack.c.bf16 %v1765_v23, %v1764_v22  ;;  %v1766_v46 = vld [vmem:[#allocation11 + $0x30] sm:$0xff] }
 0x13b   : > { %2645 = vmatprep.subr.bf16.mxu1 %v3036_v53  ;;  %v2673_v26 = vpack.c.bf16 %v1767_v25, %v1766_v46 }
 0x13d   : > { %2618 = vmatpush1.bf16.msra.mxu0 %v2617_v32  ;;  %v1771_v32 = vld [vmem:[#allocation11 + $0x58] sm:$0xff] }
 0x13e   : > { %2620 = vmatprep.subr.bf16.mxu0 %v2619_v33  ;;  %2647 = vmatpush3.bf16.msra.mxu1 %v2646_v34  ;;  %v2679_v33 = vpack.c.bf16 %v1771_v32, %v1770_v31  ;;  %v1772_v34 = vld [vmem:[#allocation11 + $0x60] sm:$0xff] }
 0x13f   : > { %2648 = vmatprep.subr.bf16.mxu1 %v3036_v53  ;;  %v2682_v36 = vpack.c.bf16 %v1773_v35, %v1772_v34  ;;  %v3382_v34 = vand.u32 127, %v1679_v45  ;;  %v2087_v45 = vld [vmem:[%s3480_s8] ss:$0 sm:$0xff] }
 0x141   : > { %2622 = vmatpush1.bf16.msra.mxu0 %v2621_v41  ;;  %vm1756_vm1 = vcmp.ge.s32.totalorder %v3382_v34, 112  ;;  %vm1754_vm2 = vcmp.lt.s32.totalorder %v3382_v34, 16 }
 0x142   : > { %2624 = vmatprep.subr.bf16.mxu0 %v2623_v42  ;;  %2650 = vmatpush3.bf16.msra.mxu1 %v2649_v43 }
 0x143   : > { %2651 = vmatprep.subr.bf16.mxu1 %v3036_v53 }
 0x145   : > { %2626 = vmatpush1.bf16.msra.mxu0 %v2625_v51  ;;  %v1689_v51 = vsub.s32 2, %v1680_v47 }
 0x146   : > { %2628 = vmatprep.subr.bf16.mxu0 %v2627_v52  ;;  %2653 = vmatpush3.bf16.msra.mxu1 %v2652_v54  ;;  %v1693_v52 = vsub.s32 3, %v1680_v47  ;;  %v1686_v54 = vrot.slane %v1677_v49, %v1685_v50 }
 0x147   : > { %2654 = vmatprep.subr.bf16.mxu1 %v3036_v53  ;;  %v1690_v55 = vrot.slane %v1677_v49, %v1689_v51 }
 0x148   : > { %v1694_v56 = vrot.slane %v1677_v49, %v1693_v52 }
 0x149   : > { %2630 = vmatpush1.bf16.msra.mxu0 %v2629_v61 }
 0x14a   : > { %2632 = vmatprep.subr.bf16.mxu0 %v2631_v62  ;;  %2656 = vmatpush3.bf16.msra.mxu1 %v2655_v63 }
 0x14b   : > { %2657 = vmatprep.subr.bf16.mxu1 %v3036_v53 }
 0x14d   : > { %2634 = vmatpush1.bf16.msra.mxu0 %v2633_v6 }
 0x14e   : > { %2636 = vmatprep.subr.bf16.mxu0 %v2635_v7  ;;  %2659 = vmatpush3.bf16.msra.mxu1 %v2658_v29 }
 0x14f   : > { %2660 = vmatprep.subr.bf16.mxu1 %v3036_v53 }
 0x151   : > { %2638 = vmatpush1.bf16.msra.mxu0 %v2637_v14 }
 0x152   : > { %2662 = vmatpush3.bf16.msra.mxu1 %v2661_v15  ;;  %2663 = vmatprep.subr.bf16.mxu0 %v3036_v53  ;;  %v1697_v15 = vsub.s32 4, %v1680_v47 }
 0x154   : > { %1594 = vmatmul.mubr.f32.vlgmr.msra.gmra.mrb[2].mxu0 %v3351_v13  ;;  %v1698_v17 = vrot.slane %v1677_v49, %v1697_v15 }
 0x155   : > { %2266 = vmatmul.mubr.f32.vlgmr.msra.gmra.mrb[6].mxu1 %v3351_v13  ;;  %2665 = vmatpush3.bf16.msra.mxu0 %v2664_v18  ;;  %v1705_v18 = vsub.s32 6, %v1680_v47 }
 0x156   : > { %2666 = vmatprep.subr.bf16.mxu0 %v3036_v53  ;;  %2300 = vmatprep.mubr.msk.f32.mxu0 %vm3037_vm0, %v3035_v10 }
 0x159   : > { %2668 = vmatpush3.bf16.msra.mxu0 %v2667_v21 }
 0x15a   : > { %2669 = vmatprep.subr.bf16.mxu0 %v3036_v53 }
 0x15d   : > { %2671 = vmatpush3.bf16.msra.mxu0 %v2670_v24  ;;  %v1706_v24 = vrot.slane %v1677_v49, %v1705_v18 }
 0x15e   : > { %2672 = vmatprep.subr.bf16.mxu0 %v3036_v53 }
 0x161   : > { %2674 = vmatpush3.bf16.msra.mxu0 %v2673_v26  ;;  %v1702_v26 = vrot.slane %v1677_v49, %v1701_v19 }
 0x162   : > { %2675 = vmatprep.subr.bf16.mxu0 %v3036_v53 }
 0x165   : > { %2677 = vmatpush3.bf16.msra.mxu0 %v2676_v30 }
 0x166   : > { %2678 = vmatprep.subr.bf16.mxu0 %v3036_v53 }
 0x169   : > { %2680 = vmatpush3.bf16.msra.mxu0 %v2679_v33 }
 0x16a   : > { %2681 = vmatprep.subr.bf16.mxu0 %v3036_v53 }
 0x16d   : > { %2683 = vmatpush3.bf16.msra.mxu0 %v2682_v36 }
 0x16e   : > { %2684 = vmatprep.subr.bf16.mxu0 %v3036_v53  ;;  %v1682_v53 = vrot.slane %v1677_v49, %v1681_v48 }
 0x171   : > { %2686 = vmatpush3.bf16.msra.mxu0 %v2685_v39  ;;  %v2086_v39 = vld [vmem:[%s3481_s9] ss:$0 sm:$0xff] }
 0x1a8   : > { %v988_v40 = vpop.f32.mrb[2].mxu1 }
 0x1a9   : > { %v2197_v41 = vpop.f32.mrb[3].mxu1 }
 0x1e8   : > { %v1271_v42 = vpop.f32.mrb[4].mxu1 }
 0x1e9   : > { %v1272_v43 = vadd.f32 %v1271_v42, %v988_v40  ;;  %v2232_v44 = vpop.f32.mrb[5].mxu1 }
 0x207   : > { %v1453_v57 = vpop.f32.mrb[0].mxu0 }
 0x208   : > { %v1714_v58 = vadd.f32 %v1682_v53, %v1453_v57  ;;  %v1455_v59 = vpop.f32.mrb[1].mxu0  ;;  %v1524_v60 = vpop.f32.mrb[0].mxu1 }
 0x209   : > { %v1715_v61 = vadd.f32 %v1686_v54, %v1455_v59  ;;  %v1716_v62 = vadd.f32 %v1690_v55, %v1524_v60  ;;  %v1526_v63 = vpop.f32.mrb[1].mxu1 }
 0x20a   : > { %2791 = vtanh.f32 %v1714_v58  ;;  %v1717_v0 = vadd.f32 %v1694_v56, %v1526_v63 }
 0x20b   : > { %v1722_v1 = vmax.f32 %v1715_v61, %v1716_v62 }
 0x20d   : > { %v1723_v2 = vmax.f32 %v1722_v1, %v1717_v0 }
 0x20f   : > { %v1724_v3 = vsub.f32 %v1715_v61, %v1723_v2  ;;  %v1727_v4 = vsub.f32 %v1716_v62, %v1723_v2  ;;  %v1730_v5 = vsub.f32 %v1717_v0, %v1723_v2 }
 0x211   : > { %v1725_v6 = vmul.f32 1.442695, %v1724_v3  ;;  %v1728_v7 = vmul.f32 1.442695, %v1727_v4  ;;  %v1731_v29 = vmul.f32 1.442695, %v1730_v5 }
 0x213   : > { %2793 = vpow2.f32 %v1725_v6 }
 0x214   : > { %v2792_v8 = vpop.eup %2791  ;;  %2795 = vpow2.f32 %v1728_v7 }
 0x215   : > { %1883 = vst [vmem:[#allocation3] sm:$0xff] %v2792_v8  ;;  %1886 = vst [vmem:[%s3296_s16] sm:$0xff] %v2792_v8  ;;  %2301 = vmatmul.mubr.f32.vlgmr.msra.gmra.mrb[4].mxu0 %v2792_v8  ;;  %2797 = vpow2.f32 %v1731_v29 }
 0x21d   : > { %v2794_v9 = vpop.eup %2793 }
 0x21e   : > { %v2796_v11 = vpop.eup %2795 }
 0x21f   : > { %v1733_v12 = vadd.f32 %v2796_v11, %v2794_v9  ;;  %v2798_v14 = vpop.eup %2797 }
 0x221   : > { %v1734_v16 = vadd.f32 %v2798_v14, %v1733_v12 }
 0x223   : > { %2799 = vrcp.f32 %v1734_v16 }
 0x227   : > { %v1595_v20 = vpop.f32.mrb[2].mxu0 }
 0x228   : > { %v1718_v21 = vadd.f32 %v1698_v17, %v1595_v20  ;;  %v1597_v22 = vpop.f32.mrb[3].mxu0  ;;  %v1666_v23 = vpop.f32.mrb[6].mxu1 }
 0x229   : > { %v1676_v46 = vadd.f32 %v1666_v23, %v1272_v43  ;;  %v2267_v25 = vpop.f32.mrb[7].mxu1  ;;  %v1719_v30 = vadd.f32 %v1702_v26, %v1597_v22 }
 0x22a   : > { %2801 = vtanh.f32 %v1718_v21 }
 0x22b   : > { %v1720_v27 = vadd.f32 %v1706_v24, %v1676_v46 }
 0x22d   : > { %v2800_v28 = vpop.eup %2799 }
 0x22e   : > { %v1737_v31 = vmul.f32 %v2800_v28, %v2794_v9  ;;  %v1738_v32 = vmul.f32 %v2800_v28, %v2796_v11  ;;  %v1739_v33 = vmul.f32 %v2800_v28, %v2798_v14 }
 0x230   : > { %v1740_v35 = vmul.f32 %v1737_v31, %v1719_v30  ;;  %v1741_v36 = vmul.f32 %v1738_v32, %v1720_v27  ;;  %v1743_v38 = vmul.f32 %v1739_v33, %v3351_v13 }
 0x232   : > { %v1742_v37 = vadd.f32 %v1741_v36, %v1740_v35 }
 0x234   : > { %v2802_v40 = vpop.eup %2801  ;;  %v1744_v41 = vadd.f32 %v1743_v38, %v1742_v37 }
 0x235   : > { %v1755_v42 = vmul.f32 %v2802_v40, %v1737_v31 }
 0x236   : > { %v1757_v43 = vsel %vm1756_vm1, %v2086_v39, %v1744_v41 }
 0x237   : > { %v1758_v44 = vsel %vm1754_vm2, %v1755_v42, %v1757_v43 }
 0x238   : > { %1884 = vst [vmem:[#allocation4] sm:$0xff] %v1758_v44  ;;  %1887 = vst [vmem:[%s3298_s19] sm:$0xff] %v1758_v44 }
 0x2e8   : > { %v1849_v13 = vpop.f32.mrb[4].mxu0 }
 0x2e9   : > { %v1850_v47 = vadd.f32 %v2087_v45, %v1849_v13  ;;  %v2302_v48 = vpop.f32.mrb[5].mxu0 }
 0x2eb   : > { %1853 = vmax.xlane.f32.xlu0 %v1850_v47 }
 0x378   : > { %v1854_v49 = vpop.xlane.xlu0 %1853 }
 0x379   : > { %v1855_v50 = vsub.f32 %v1850_v47, %v1854_v49 }
 0x37b   : > { %vm1863_vm3 = vcmp.eq.f32.partialorder %v1855_v50, 0.0  ;;  %v1856_v51 = vmul.f32 1.442695, %v1855_v50 }
 0x37c   : > { %v1864_v52 = vsel %vm1863_vm3, %v3382_v34, 128 }
 0x37d   : > { %v1866_v53 = vshra.s32 %v1864_v52, 16  ;;  %2803 = vpow2.f32 %v1856_v51  ;;  %v1865_v56 = vand.u32 65535, %v1864_v52 }
 0x37f   : > { %v1868_v54 = vcvt.s32.f32 %v1866_v53  ;;  %v1867_v58 = vcvt.s32.f32 %v1865_v56 }
 0x381   : > { %1869 = vmin.xlane.f32.xlu0 %v1868_v54 }
 0x387   : > { %v2804_v55 = vpop.eup %2803 }
 0x388   : > { %1858 = vadd.xlane.f32.xlu1 %v2804_v55 }
 0x40e   : > { %v3395_v57 = vpop.xlane.xlu0 %1869 }
 0x40f   : > { %vm1871_vm4 = vcmp.eq.f32.partialorder %v1868_v54, %v3395_v57 }
 0x410   : > { %v1872_v59 = vsel %vm1871_vm4, %v1867_v58, inf }
 0x411   : > { %1873 = vmin.xlane.f32.xlu1 %v1872_v59 }
 0x415   : > { %v1859_v60 = vpop.xlane.xlu1 %1858 }
 0x416   : > { %2805 = vlog2.f32 %v1859_v60 }
 0x420   : > { %v2806_v61 = vpop.eup %2805 }
 0x421   : > { %v1861_v62 = vmul.f32 0.6931472, %v2806_v61 }
 0x423   : > { %v1862_v63 = vsub.f32 %v1855_v50, %v1861_v62 }
 0x425   : > { %1885 = vst [vmem:[%s3294_s29] sm:$0xff] %v1862_v63 }
 0x426   : > { %2932 = shalt.err (!%p2929_p1)
}
 0x427   : > { %s2933_s29 = scalar_lea.hbm %s3405_s28, 128  ;;  %s2937_s21 = scalar_lea.hbm %s3517_s17, 768 }
 0x428   : > { %p2934_p10 = scmp.ne.s32.totalorder %s3405_s28, %s2933_s29  ;;  %p2938_p13 = scmp.lt.u32.totalorder %s3405_s28, %s3517_s17 }
 0x429   : > { %p2939_p7 = scmp.lt.u32.totalorder %s2937_s21, %s2933_s29  ;;  %p2941_p12 = scmp.lt.u32.totalorder %s2933_s29, %s3405_s28 }
 0x42a   : > { %p2935_p3 = pnand %p2934_p10, %p3518_p0 }
 0x42b   : > { %p2940_p8 = por %p2939_p7, %p2938_p13 }
 0x42c   : > { %p2936_p4 = pneg %p2935_p3 }
 0x42d   : > { %p2942_p2 = por %p2941_p12, %p2940_p8 }
 0x42f   : > { %p2943_p6 = pnand %p2942_p2, %p2936_p4 }
 0x431   : > { %2946 = shalt.err (!%p2943_p6)
}
 0x432   : > { %2715 = dma.vmem_to_hbm [thread:$0]  (%p3518_p0), %s1915_s30, 128, %s3405_s28, %s1893_s23  }
 0x433   : > { %s3519_s15 = sld [smem:[#allocation28_spill]]  ;;  %s1927_s16 = sshll.u32 %s3298_s19, 4  ;;  %s1928_s16 = int_to_ptr.vmem [resolvable:$true] %s1927_s16 }
 0x434   : > { %s1898_s29 = scalar_lea.sflag [#allocation15], %s3286_s14  ;;  %s2947_s12 = scalar_lea.vmem %s1928_s16, 128 }
 0x435   : > { %p2948_p9 = scmp.ne.s32.totalorder %s1928_s16, %s2947_s12  ;;  %s3039_s21 = smov [#allocation14]  }
 0x436   : > { %s2951_s26 = sshll.u32 %s3039_s21, 4  ;;  %s2952_s26 = int_to_ptr.vmem [resolvable:$false] %s2951_s26 }
 0x437   : > { %p2949_p5 = pnand %p2948_p9, %p3518_p0  ;;  %s2953_s27 = scalar_lea.vmem %s2952_s26, 256 }
 0x438   : > { %p2954_p1 = scmp.lt.s32.totalorder %s1928_s16, %s2952_s26  ;;  %p2955_p10 = scmp.lt.s32.totalorder %s2953_s27, %s2947_s12 }
 0x439   : > { %s3431_s18 = scalar_lea.hbm %s3519_s15, %s2091_s24  ;;  %p2950_p11 = pneg %p2949_p5 }
 0x43a   : > { %p2956_p3 = por %p2955_p10, %p2954_p1 }
 0x43c   : > { %p2957_p4 = pnand %p2956_p3, %p2950_p11 }
 0x43e   : > { %2960 = shalt.err (!%p2957_p4)
}
 0x43f   : > { %s2961_s25 = scalar_lea.hbm %s3431_s18, 128  ;;  %s2965_s24 = scalar_lea.hbm %s3519_s15, 768 }
 0x440   : > { %p2962_p13 = scmp.ne.s32.totalorder %s3431_s18, %s2961_s25  ;;  %p2966_p12 = scmp.lt.u32.totalorder %s3431_s18, %s3519_s15 }
 0x441   : > { %p2967_p2 = scmp.lt.u32.totalorder %s2965_s24, %s2961_s25  ;;  %p2969_p9 = scmp.lt.u32.totalorder %s2961_s25, %s3431_s18 }
 0x442   : > { %p2963_p7 = pnand %p2962_p13, %p3518_p0 }
 0x443   : > { %p2968_p6 = por %p2967_p2, %p2966_p12 }
 0x444   : > { %p2964_p8 = pneg %p2963_p7 }
 0x445   : > { %p2970_p5 = por %p2969_p9, %p2968_p6 }
 0x447   : > { %p2971_p11 = pnand %p2970_p5, %p2964_p8 }
 0x449   : > { %2974 = shalt.err (!%p2971_p11)
}
 0x44a   : > { %2716 = dma.vmem_to_hbm [thread:$0]  (%p3518_p0), %s1928_s16, 128, %s3431_s18, %s1898_s29   ;;  %v1876_v0 = vcvt.f32.s32 %v3395_v57 }
 0x44c   : > { %v1877_v2 = vshll.u32 %v1876_v0, 16 }
 0x49e   : > { %v1874_v1 = vpop.xlane.xlu1 %1873 }
 0x49f   : > { %v1875_v3 = vcvt.f32.s32 %v1874_v1 }
 0x4a1   : > { %v1878_v4 = vadd.s32 %v1877_v2, %v1875_v3 }
 0x4a3   : > { %vm1879_vm5 = vcmp.eq.s32.totalorder %v3382_v34, %v1878_v4 }
 0x4a4   : > { %v2088_v5 = vsel %vm1879_vm5, 1.0, %v3035_v10 }
 0x4a5   : > { %1882 = vst [vmem:[#allocation2] sm:$0xff] %v2088_v5 }
 0x4a6 PF: > { %s3520_s23 = sld [smem:[#allocation23_spill]]  ;;  %s3521_s20 = sld [smem:[#allocation21_spill]] }
 0x4a7   : > { %s3522_s11 = sld [smem:[#allocation26_spill]] }
 0x4ac   : > { %p2747_p1 = scmp.ge.s32.totalorder %s3520_s23, 2  ;;  %s1946_s12 = sand.u32 1, %s3521_s20  }
 0x4ad   : > { %p3523_p10 = scmp.ne.s32.totalorder %s3522_s11, 0  ;;  %s1947_s13 = scalar_lea.sflag [#allocation7], %s1946_s12 }
 0x4af   : > { %p2733_p3 = pnand %p2747_p1, %p3523_p10 }
 0x4b1   : > { %3004 = dma.done.wait (!%p2733_p3), %s1947_s13, 128  }
 0x4b2   : > { %3006 = vsyncadd (!%p2733_p3), %s1947_s13, 4294967168  ;;  %s1956_s18 = scalar_lea.sflag [#allocation15], %s1946_s12 }
 0x4b3   : > { %3008 = dma.done.wait (!%p2733_p3), %s1956_s18, 128  }
 0x4b4   : > { %3010 = vsyncadd (!%p2733_p3), %s1956_s18, 4294967168  ;;  %s3524_s24 = sld [smem:[#allocation24_spill]]  ;;  %s3525_s16 = sld [smem:[#allocation22_spill]] }
 0x4b5   : > { %s3526_s23 = sld [smem:[#allocation25_spill]]  ;;  %s3527_s21 = smov %s3017_s22 }
 0x4ba   : > { %p29_p0 = scmp.ge.s32.totalorder %s3524_s24, 8   ;;  %s3528_s22 = smov %s3525_s16 }
 0x4bc   :  { %31 = sbr.rel (!%p29_p0) target bundleno = 11 (0xb), region = 142 }
 0x4c3   :  { %1961 = vsyncpa [#allocation6], 1 }
 0x4c4   :  { %1963 = vsyncpa [#allocation6 + $0x1], 1 }
 0x4c5   :  { %1964 = vsyncpa [#allocation9], 1 }
 0x4c6   :  { %1965 = vsyncpa [#allocation12], 1 }
 0x4c7   :  { %1966 = vsyncpa [#allocation7], 1 }
 0x4c8   :  { %1968 = vsyncpa [#allocation7 + $0x1], 1 }
 0x4c9   :  { %1969 = vsyncpa [#allocation15], 1 }
 0x4ca   :  { %1971 = vsyncpa [#allocation15 + $0x1], 1 }

</bundles_post_ra>
